<compile_context>
chip_gen: v7x
topology: tpu7x:2x2x1
jax: 0.10.0
libtpu: 0.0.40
codegen_flags: <defaults>
</compile_context>

<pallas_src>
import functools

import numpy as np
import jax
import jax.numpy as jnp
from jax import lax
from jax.experimental import pallas as pl
from jax.experimental.pallas import tpu as pltpu


# ----------------------------------------------------------------------------
# Fused kernel: one grid step == one batch element (grid axis is "parallel").
# ----------------------------------------------------------------------------
def _encoder_kernel(x_ref, wb_ref, bb_ref, wi_ref, bi_ref, *rest,
                    K_win, bank_left, bank_right, ks, subsample, eps, leaky):
    it = iter(rest)
    block_refs = [(next(it), next(it), next(it), next(it), sub)
                  for sub in subsample]
    wh_ref, bh_ref = next(it), next(it)
    heads_ref = next(it)                                   # output ref

    f32 = jnp.float32

    # `leaky` is a static config float; branch resolved at trace time.
    def act(v):
        if leaky == 0.0:
            return jnp.maximum(v, 0.0)
        return jnp.where(v >= 0, v, leaky * v)

    def inorm(h):                                          # InstanceNorm1d(affine=False)
        m = jnp.mean(h, axis=-1, keepdims=True)
        hc = h - m
        var = jnp.mean(hc * hc, axis=-1, keepdims=True)
        return hc * lax.rsqrt(var + eps)

    def reflect_pad(v, p_l, p_r):
        # PyTorch "reflect" padding along time, built in registers (no scratch).
        Lv = v.shape[-1]
        parts = [v[:, j:j + 1] for j in range(p_l, 0, -1)]          # v[:, p_l..1]
        parts.append(v)
        parts += [v[:, Lv - 2 - j:Lv - 1 - j] for j in range(p_r)]  # v[:, L-2..]
        return jnp.concatenate(parts, axis=-1) if len(parts) > 1 else v

    def conv1d(v, w_ref, b_ref, K, p_l, p_r):
        # Reflect-padded stride-1 conv as ONE MXU dot (contraction = K*c_src):
        # weights are packed host-side to (c_out, K*c_src); the K shifted views
        # of the padded activation are stacked along sublanes (im2col in regs).
        Lc = v.shape[-1]
        xp = reflect_pad(v, p_l, p_r)
        cols = jnp.concatenate([xp[:, j:j + Lc] for j in range(K)], axis=0)
        return jnp.dot(w_ref[...], cols, preferred_element_type=f32) + b_ref[...]

    p_l = ks // 2
    p_r = ks - 1 - p_l

    xb = x_ref[0].astype(f32)                                      # (c_in, L)

    # ---- conv bank (all kernel sizes fused into one padded weight window) ----
    bank = act(conv1d(xb, wb_ref, bb_ref, K_win, bank_left, bank_right))
    # channel concat + 1x1 in_conv as one stacked dot
    h = jnp.dot(wi_ref[...], jnp.concatenate([bank, xb], axis=0),
                preferred_element_type=f32) + bi_ref[...]
    out = act(inorm(h))                                            # (c_h, L)
    # TODO(synk): nn.Dropout is identity in eval mode; training-mode dropout is
    # not implemented.

    Lc = xb.shape[-1]
    for (w1, b1, w2, b2, sub) in block_refs:
        y = act(inorm(conv1d(out, w1, b1, ks, p_l, p_r)))
        y2 = conv1d(y, w2, b2, ks, p_l, p_r)                       # stride-1 full
        if sub > 1:
            # stride + ceil-mode avg_pool1d as tiny iota-built selection /
            # pooling matmuls (no extra HBM args / DMAs).
            # TODO(synk): for production-length sequences replace these with a
            # strided lane slice / space-to-depth to drop the extra O(c*Lc*Ln)
            # FLOPs.
            Ln = -(-Lc // sub)
            rows = lax.broadcasted_iota(jnp.int32, (Lc, Ln), 0)
            tcol = lax.broadcasted_iota(jnp.int32, (Lc, Ln), 1)
            sel = (rows == tcol * sub).astype(f32)
            member = ((rows >= tcol * sub) & (rows < tcol * sub + sub)).astype(f32)
            cnt = jnp.minimum(sub, Lc - tcol[:1] * sub).astype(f32)     # (1, Ln)
            y2 = jnp.dot(y2, sel, preferred_element_type=f32)
            res = jnp.dot(out, member / cnt, preferred_element_type=f32)
            Lc = Ln
        else:
            res = out
        out = act(inorm(y2)) + res

    # ---- mean / log_sigma heads: one stacked dot, one store ----
    heads = jnp.dot(wh_ref[...], out, preferred_element_type=f32) + bh_ref[...]
    heads_ref[0] = heads.astype(heads_ref.dtype)


# ----------------------------------------------------------------------------
# Wrapper: builds the single pallas_call (grid over batch, "parallel").
# ----------------------------------------------------------------------------
def make_content_encoder(cfg):
    c_in, c_out = cfg["c_in"], cfg["c_out"]
    ks = cfg["kernel_size"]
    bank_ks = tuple(cfg["bank_ks"])
    subsample = tuple(cfg["subsample"])
    leaky = 0.01 if cfg["act"] == "lrelu" else 0.0
    eps = 1e-5

    bank_left = max(k // 2 for k in bank_ks)
    bank_right = max(k - 1 - k // 2 for k in bank_ks)
    K_win = bank_left + bank_right + 1

    def forward(packed, x):
        B, _, L = x.shape
        # PyTorch reflect padding requires pad < L
        assert bank_left < L and bank_right < L and ks // 2 < L

        L_final = L
        for sub in subsample:
            if sub > 1:
                L_final = -(-L_final // sub)

        args = [x, packed["wb"], packed["bb"], packed["wi"], packed["bi"]]
        for l in range(len(subsample)):
            args += [packed["w1"][l], packed["b1"][l],
                     packed["w2"][l], packed["b2"][l]]
        args += [packed["wh"], packed["bh"]]

        def w_spec(a):                       # grid-invariant full-array block
            nd = a.ndim
            return pl.BlockSpec(a.shape, lambda b, nd=nd: (0,) * nd)

        in_specs = [pl.BlockSpec((1, c_in, L), lambda b: (b, 0, 0))]
        in_specs += [w_spec(a) for a in args[1:]]

        kernel = functools.partial(
            _encoder_kernel, K_win=K_win, bank_left=bank_left,
            bank_right=bank_right, ks=ks, subsample=subsample,
            eps=eps, leaky=leaky)

        heads = pl.pallas_call(
            kernel,
            out_shape=jax.ShapeDtypeStruct((B, 2 * c_out, L_final), x.dtype),
            grid=(B,),
            in_specs=in_specs,
            out_specs=pl.BlockSpec((1, 2 * c_out, L_final), lambda b: (b, 0, 0)),
            compiler_params=pltpu.CompilerParams(
                dimension_semantics=("parallel",),
                vmem_limit_bytes=32 * 1024 * 1024),
        )(*args)

        # split the stacked heads slab outside the kernel (cheap XLA slices)
        return heads[:, :c_out, :], heads[:, c_out:, :]

    return forward


# ----------------------------------------------------------------------------
# Parameter construction (PyTorch-default-like uniform init) + packing
# ----------------------------------------------------------------------------
def _conv_params(key, c_out, c_in, k):
    kw, kb = jax.random.split(key)
    bound = 1.0 / jnp.sqrt(float(c_in * k))
    w = jax.random.uniform(kw, (c_out, c_in, k), jnp.float32, -bound, bound)
    b = jax.random.uniform(kb, (c_out,), jnp.float32, -bound, bound)
    return w, b


def make_params(key, cfg):
    c_in, c_h, c_out = cfg["c_in"], cfg["c_h"], cfg["c_out"]
    ks, c_bank = cfg["kernel_size"], cfg["c_bank"]
    bank_ks = cfg["bank_ks"]
    n_blocks = cfg["n_conv_blocks"]
    keys = jax.random.split(key, len(bank_ks) + 2 * n_blocks + 3)
    ki = iter(keys)
    return {
        "bank": [_conv_params(next(ki), c_bank, c_in, k) for k in bank_ks],
        "in_conv": _conv_params(next(ki), c_h, c_bank * len(bank_ks) + c_in, 1),
        "first": [_conv_params(next(ki), c_h, c_h, ks) for _ in range(n_blocks)],
        "second": [_conv_params(next(ki), c_h, c_h, ks) for _ in range(n_blocks)],
        "mean": _conv_params(next(ki), c_out, c_h, 1),
        "std": _conv_params(next(ki), c_out, c_h, 1),
    }


def pack_params(params, cfg):
    """Repack PyTorch-layout conv params into the fused im2col kernel layout."""
    c_in, c_h, c_out = cfg["c_in"], cfg["c_h"], cfg["c_out"]
    c_bank = cfg["c_bank"]
    ks = cfg["kernel_size"]
    bank_ks = cfg["bank_ks"]
    bank_left = max(k // 2 for k in bank_ks)
    bank_right = max(k - 1 - k // 2 for k in bank_ks)
    K_win = bank_left + bank_right + 1
    c_bank_tot = c_bank * len(bank_ks)

    # conv bank -> one zero-padded (K_win, c_bank_tot, c_in) window, flattened
    # to (c_bank_tot, K_win*c_in) so the whole bank is a single deep dot.
    wb = np.zeros((K_win, c_bank_tot, c_in), np.float32)
    bbs = []
    for m, ((w, b), k) in enumerate(zip(params["bank"], bank_ks)):
        w = np.asarray(w)
        off = bank_left - k // 2
        for j in range(k):
            wb[off + j, m * c_bank:(m + 1) * c_bank, :] = w[:, :, j]
        bbs.append(np.asarray(b))
    wb_flat = jnp.asarray(
        np.transpose(wb, (1, 0, 2)).reshape(c_bank_tot, K_win * c_in))
    bb = jnp.asarray(np.concatenate(bbs).reshape(c_bank_tot, 1))

    # 1x1 in_conv kept whole: kernel fuses concat([act(bank), x]) @ wi.T
    wi, bi = params["in_conv"]
    wi_full = wi[:, :, 0]                                   # (c_h, c_bank_tot+c_in)
    bi = bi.reshape(c_h, 1)

    def flat_k(w):                                          # (O,I,K) -> (O, K*I)
        return jnp.transpose(w, (0, 2, 1)).reshape(c_h, ks * c_h)

    w1s, b1s, w2s, b2s = [], [], [], []
    for l in range(cfg["n_conv_blocks"]):
        w1, b1 = params["first"][l]
        w2, b2 = params["second"][l]
        w1s.append(flat_k(w1)); b1s.append(b1.reshape(c_h, 1))
        w2s.append(flat_k(w2)); b2s.append(b2.reshape(c_h, 1))

    wm, bm = params["mean"]
    ws_, bs_ = params["std"]
    wh = jnp.concatenate([wm[:, :, 0], ws_[:, :, 0]], axis=0)   # (2*c_out, c_h)
    bh = jnp.concatenate([bm, bs_]).reshape(2 * c_out, 1)

    return dict(wb=wb_flat, bb=bb, wi=wi_full, bi=bi,
                w1=w1s, b1=b1s, w2=w2s, b2=b2s, wh=wh, bh=bh)


# ----------------------------------------------------------------------------
# Pure-JAX reference of the PyTorch module (for correctness checking only)
# ----------------------------------------------------------------------------
def _avg_pool1d_ceil_ref(x, k):
    B, C, L = x.shape
    L_out = -(-L // k)
    xp = jnp.pad(x, ((0, 0), (0, 0), (0, L_out * k - L)))
    s = xp.reshape(B, C, L_out, k).sum(-1)
    starts = jnp.arange(L_out) * k
    counts = (jnp.minimum(starts + k, L) - starts).astype(x.dtype)
    return s / counts


def _ref_forward(params, x, cfg):
    leaky = 0.01 if cfg["act"] == "lrelu" else 0.0
    act = ((lambda v: jnp.maximum(v, 0.0)) if leaky == 0.0
           else (lambda v: jnp.where(v >= 0, v, leaky * v)))

    def conv1d(h, w, b, stride=1):
        k = w.shape[-1]
        pad = (k // 2, k // 2) if k % 2 == 1 else (k // 2, k // 2 - 1)
        hp = jnp.pad(h, ((0, 0), (0, 0), pad), mode="reflect")
        o = lax.conv_general_dilated(hp, w, (stride,), "VALID",
                                     dimension_numbers=("NCH", "OIH", "NCH"),
                                     precision=lax.Precision.HIGHEST)
        return o + b[None, :, None]

    def inorm(h):
        m = jnp.mean(h, axis=-1, keepdims=True)
        v = jnp.mean((h - m) ** 2, axis=-1, keepdims=True)
        return (h - m) / jnp.sqrt(v + 1e-5)

    outs = [act(conv1d(x, w, b)) for (w, b) in params["bank"]]
    out = jnp.concatenate(outs + [x], axis=1)
    out = act(inorm(conv1d(out, *params["in_conv"])))
    for l in range(cfg["n_conv_blocks"]):
        sub = cfg["subsample"][l]
        y = act(inorm(conv1d(out, *params["first"][l])))
        y = act(inorm(conv1d(y, *params["second"][l], stride=sub)))
        if sub > 1:
            out = _avg_pool1d_ceil_ref(out, sub)
        out = y + out
    return conv1d(out, *params["mean"]), conv1d(out, *params["std"])


# ----------------------------------------------------------------------------
if __name__ == "__main__":
    cfg = dict(
        c_in=4, c_h=32, c_out=8, kernel_size=3,
        bank_size=4, bank_scale=1, c_bank=8,
        n_conv_blocks=2, subsample=[1, 2],
        act="relu", dropout_rate=0.0,
    )
    cfg["bank_ks"] = list(range(cfg["bank_scale"], cfg["bank_size"] + 1,
                                cfg["bank_scale"]))

    key = jax.random.PRNGKey(0)
    pkey, xkey = jax.random.split(key)
    params = make_params(pkey, cfg)
    packed = pack_params(params, cfg)

    B, T = 2, 16
    x = jax.random.normal(xkey, (B, cfg["c_in"], T), dtype=jnp.float32)

    forward = make_content_encoder(cfg)
    mu, log_sigma = forward(packed, x)
    jax.block_until_ready((mu, log_sigma))

    # shape + sanity checks (time axis downsampled by prod(subsample) = 2)
    assert mu.shape == (B, cfg["c_out"], T // 2), mu.shape
    assert log_sigma.shape == (B, cfg["c_out"], T // 2), log_sigma.shape
    assert bool(jnp.all(jnp.isfinite(mu))) and bool(jnp.all(jnp.isfinite(log_sigma)))

    # numerical check against a pure-JAX reference of the PyTorch module
    mu_r, ls_r = _ref_forward(params, x, cfg)
    np.testing.assert_allclose(np.asarray(mu), np.asarray(mu_r),
                               rtol=1e-2, atol=1e-2)
    np.testing.assert_allclose(np.asarray(log_sigma), np.asarray(ls_r),
                               rtol=1e-2, atol=1e-2)

    print("KERNEL_OK")
</pallas_src>

<mosaic_0001>
module attributes {stable_mosaic.version = 11 : i64} {
  func.func @_encoder_kernel(%arg0: i32, %arg1: memref<1x4x16xf32, #tpu.memory_space<vmem>>, %arg2: memref<32x16xf32, #tpu.memory_space<vmem>>, %arg3: memref<32x1xf32, #tpu.memory_space<vmem>>, %arg4: memref<32x36xf32, #tpu.memory_space<vmem>>, %arg5: memref<32x1xf32, #tpu.memory_space<vmem>>, %arg6: memref<32x96xf32, #tpu.memory_space<vmem>>, %arg7: memref<32x1xf32, #tpu.memory_space<vmem>>, %arg8: memref<32x96xf32, #tpu.memory_space<vmem>>, %arg9: memref<32x1xf32, #tpu.memory_space<vmem>>, %arg10: memref<32x96xf32, #tpu.memory_space<vmem>>, %arg11: memref<32x1xf32, #tpu.memory_space<vmem>>, %arg12: memref<32x96xf32, #tpu.memory_space<vmem>>, %arg13: memref<32x1xf32, #tpu.memory_space<vmem>>, %arg14: memref<16x32xf32, #tpu.memory_space<vmem>>, %arg15: memref<16x1xf32, #tpu.memory_space<vmem>>, %arg16: memref<1x16x8xf32, #tpu.memory_space<vmem>>) attributes {dimension_semantics = [#tpu.dimension_semantics<parallel>], iteration_bounds = array<i64: 2>, scalar_prefetch = 0 : i64, scratch_operands = 0 : i64, tpu.core_type = #tpu.core_type<tc>, window_params = [{transform_indices = @transform_0, window_bounds = array<i64: 1, 4, 16>}, {pipeline_mode = #tpu.pipeline_mode<synchronous>, transform_indices = @transform_1, window_bounds = array<i64: 32, 16>}, {pipeline_mode = #tpu.pipeline_mode<synchronous>, transform_indices = @transform_2, window_bounds = array<i64: 32, 1>}, {pipeline_mode = #tpu.pipeline_mode<synchronous>, transform_indices = @transform_3, window_bounds = array<i64: 32, 36>}, {pipeline_mode = #tpu.pipeline_mode<synchronous>, transform_indices = @transform_4, window_bounds = array<i64: 32, 1>}, {pipeline_mode = #tpu.pipeline_mode<synchronous>, transform_indices = @transform_5, window_bounds = array<i64: 32, 96>}, {pipeline_mode = #tpu.pipeline_mode<synchronous>, transform_indices = @transform_6, window_bounds = array<i64: 32, 1>}, {pipeline_mode = #tpu.pipeline_mode<synchronous>, transform_indices = @transform_7, window_bounds = array<i64: 32, 96>}, {pipeline_mode = #tpu.pipeline_mode<synchronous>, transform_indices = @transform_8, window_bounds = array<i64: 32, 1>}, {pipeline_mode = #tpu.pipeline_mode<synchronous>, transform_indices = @transform_9, window_bounds = array<i64: 32, 96>}, {pipeline_mode = #tpu.pipeline_mode<synchronous>, transform_indices = @transform_10, window_bounds = array<i64: 32, 1>}, {pipeline_mode = #tpu.pipeline_mode<synchronous>, transform_indices = @transform_11, window_bounds = array<i64: 32, 96>}, {pipeline_mode = #tpu.pipeline_mode<synchronous>, transform_indices = @transform_12, window_bounds = array<i64: 32, 1>}, {pipeline_mode = #tpu.pipeline_mode<synchronous>, transform_indices = @transform_13, window_bounds = array<i64: 16, 32>}, {pipeline_mode = #tpu.pipeline_mode<synchronous>, transform_indices = @transform_14, window_bounds = array<i64: 16, 1>}, {transform_indices = @transform_15, window_bounds = array<i64: 1, 16, 8>}]} {
    %c0 = arith.constant 0 : index
    %c0_0 = arith.constant 0 : index
    %c0_1 = arith.constant 0 : index
    %0 = vector.load %arg1[%c0, %c0_0, %c0_1] : memref<1x4x16xf32, #tpu.memory_space<vmem>>, vector<1x4x16xf32>
    %1 = vector.shape_cast %0 : vector<1x4x16xf32> to vector<4x16xf32>
    %2 = vector.extract_strided_slice %1 {offsets = [0, 2], sizes = [4, 1], strides = [1, 1]} : vector<4x16xf32> to vector<4x1xf32>
    %3 = vector.extract_strided_slice %1 {offsets = [0, 1], sizes = [4, 1], strides = [1, 1]} : vector<4x16xf32> to vector<4x1xf32>
    %4 = vector.extract_strided_slice %1 {offsets = [0, 14], sizes = [4, 1], strides = [1, 1]} : vector<4x16xf32> to vector<4x1xf32>
    %5 = tpu.concatenate %2, %3, %1, %4 in 1 : vector<4x1xf32>, vector<4x1xf32>, vector<4x16xf32>, vector<4x1xf32> -> vector<4x19xf32>
    %6 = vector.extract_strided_slice %5 {offsets = [0, 0], sizes = [4, 16], strides = [1, 1]} : vector<4x19xf32> to vector<4x16xf32>
    %7 = vector.extract_strided_slice %5 {offsets = [0, 1], sizes = [4, 16], strides = [1, 1]} : vector<4x19xf32> to vector<4x16xf32>
    %8 = vector.extract_strided_slice %5 {offsets = [0, 2], sizes = [4, 16], strides = [1, 1]} : vector<4x19xf32> to vector<4x16xf32>
    %9 = vector.extract_strided_slice %5 {offsets = [0, 3], sizes = [4, 16], strides = [1, 1]} : vector<4x19xf32> to vector<4x16xf32>
    %10 = tpu.concatenate %6, %7, %8, %9 in 0 : vector<4x16xf32>, vector<4x16xf32>, vector<4x16xf32>, vector<4x16xf32> -> vector<16x16xf32>
    %c0_2 = arith.constant 0 : index
    %c0_3 = arith.constant 0 : index
    %11 = vector.load %arg2[%c0_2, %c0_3] : memref<32x16xf32, #tpu.memory_space<vmem>>, vector<32x16xf32>
    %cst = arith.constant dense<0.000000e+00> : vector<32x16xf32>
    %12 = tpu.matmul %11, %10, %cst {dimension_numbers = #tpu.dot_dimension_numbers<[1], [0], [0], [1], [0, 0, 1, 1], [], []>} : vector<32x16xf32>, vector<16x16xf32>, vector<32x16xf32> -> vector<32x16xf32>
    %c0_4 = arith.constant 0 : index
    %c0_5 = arith.constant 0 : index
    %13 = vector.load %arg3[%c0_4, %c0_5] : memref<32x1xf32, #tpu.memory_space<vmem>>, vector<32x1xf32>
    %14 = vector.broadcast %13 : vector<32x1xf32> to vector<32x16xf32>
    %15 = arith.addf %12, %14 : vector<32x16xf32>
    %cst_6 = arith.constant 0.000000e+00 : f32
    %16 = vector.broadcast %cst_6 : f32 to vector<32x16xf32>
    %17 = arith.maximumf %15, %16 : vector<32x16xf32>
    %c0_7 = arith.constant 0 : index
    %c0_8 = arith.constant 0 : index
    %18 = vector.load %arg4[%c0_7, %c0_8] : memref<32x36xf32, #tpu.memory_space<vmem>>, vector<32x36xf32>
    %19 = tpu.concatenate %17, %1 in 0 : vector<32x16xf32>, vector<4x16xf32> -> vector<36x16xf32>
    %cst_9 = arith.constant dense<0.000000e+00> : vector<32x16xf32>
    %20 = tpu.matmul %18, %19, %cst_9 {dimension_numbers = #tpu.dot_dimension_numbers<[1], [0], [0], [1], [0, 0, 1, 1], [], []>} : vector<32x36xf32>, vector<36x16xf32>, vector<32x16xf32> -> vector<32x16xf32>
    %c0_10 = arith.constant 0 : index
    %c0_11 = arith.constant 0 : index
    %21 = vector.load %arg5[%c0_10, %c0_11] : memref<32x1xf32, #tpu.memory_space<vmem>>, vector<32x1xf32>
    %22 = vector.broadcast %21 : vector<32x1xf32> to vector<32x16xf32>
    %23 = arith.addf %20, %22 : vector<32x16xf32>
    %cst_12 = arith.constant dense<0.000000e+00> : vector<32xf32>
    %24 = vector.multi_reduction <add>, %23, %cst_12 [1] : vector<32x16xf32> to vector<32xf32>
    %25 = vector.shape_cast %24 : vector<32xf32> to vector<32x1xf32>
    %cst_13 = arith.constant 1.600000e+01 : f32
    %26 = vector.broadcast %cst_13 : f32 to vector<32x1xf32>
    %27 = arith.divf %25, %26 : vector<32x1xf32>
    %28 = vector.broadcast %27 : vector<32x1xf32> to vector<32x16xf32>
    %29 = arith.subf %23, %28 : vector<32x16xf32>
    %30 = arith.mulf %29, %29 : vector<32x16xf32>
    %cst_14 = arith.constant dense<0.000000e+00> : vector<32xf32>
    %31 = vector.multi_reduction <add>, %30, %cst_14 [1] : vector<32x16xf32> to vector<32xf32>
    %32 = vector.shape_cast %31 : vector<32xf32> to vector<32x1xf32>
    %cst_15 = arith.constant 1.600000e+01 : f32
    %33 = vector.broadcast %cst_15 : f32 to vector<32x1xf32>
    %34 = arith.divf %32, %33 : vector<32x1xf32>
    %cst_16 = arith.constant 9.99999974E-6 : f32
    %35 = vector.broadcast %cst_16 : f32 to vector<32x1xf32>
    %36 = arith.addf %34, %35 : vector<32x1xf32>
    %37 = math.rsqrt %36 : vector<32x1xf32>
    %38 = vector.broadcast %37 : vector<32x1xf32> to vector<32x16xf32>
    %39 = arith.mulf %29, %38 : vector<32x16xf32>
    %cst_17 = arith.constant 0.000000e+00 : f32
    %40 = vector.broadcast %cst_17 : f32 to vector<32x16xf32>
    %41 = arith.maximumf %39, %40 : vector<32x16xf32>
    %42 = vector.extract_strided_slice %41 {offsets = [0, 1], sizes = [32, 1], strides = [1, 1]} : vector<32x16xf32> to vector<32x1xf32>
    %43 = vector.extract_strided_slice %41 {offsets = [0, 14], sizes = [32, 1], strides = [1, 1]} : vector<32x16xf32> to vector<32x1xf32>
    %44 = tpu.concatenate %42, %41, %43 in 1 : vector<32x1xf32>, vector<32x16xf32>, vector<32x1xf32> -> vector<32x18xf32>
    %45 = vector.extract_strided_slice %44 {offsets = [0, 0], sizes = [32, 16], strides = [1, 1]} : vector<32x18xf32> to vector<32x16xf32>
    %46 = vector.extract_strided_slice %44 {offsets = [0, 1], sizes = [32, 16], strides = [1, 1]} : vector<32x18xf32> to vector<32x16xf32>
    %47 = vector.extract_strided_slice %44 {offsets = [0, 2], sizes = [32, 16], strides = [1, 1]} : vector<32x18xf32> to vector<32x16xf32>
    %48 = tpu.concatenate %45, %46, %47 in 0 : vector<32x16xf32>, vector<32x16xf32>, vector<32x16xf32> -> vector<96x16xf32>
    %c0_18 = arith.constant 0 : index
    %c0_19 = arith.constant 0 : index
    %49 = vector.load %arg6[%c0_18, %c0_19] : memref<32x96xf32, #tpu.memory_space<vmem>>, vector<32x96xf32>
    %cst_20 = arith.constant dense<0.000000e+00> : vector<32x16xf32>
    %50 = tpu.matmul %49, %48, %cst_20 {dimension_numbers = #tpu.dot_dimension_numbers<[1], [0], [0], [1], [0, 0, 1, 1], [], []>} : vector<32x96xf32>, vector<96x16xf32>, vector<32x16xf32> -> vector<32x16xf32>
    %c0_21 = arith.constant 0 : index
    %c0_22 = arith.constant 0 : index
    %51 = vector.load %arg7[%c0_21, %c0_22] : memref<32x1xf32, #tpu.memory_space<vmem>>, vector<32x1xf32>
    %52 = vector.broadcast %51 : vector<32x1xf32> to vector<32x16xf32>
    %53 = arith.addf %50, %52 : vector<32x16xf32>
    %cst_23 = arith.constant dense<0.000000e+00> : vector<32xf32>
    %54 = vector.multi_reduction <add>, %53, %cst_23 [1] : vector<32x16xf32> to vector<32xf32>
    %55 = vector.shape_cast %54 : vector<32xf32> to vector<32x1xf32>
    %cst_24 = arith.constant 1.600000e+01 : f32
    %56 = vector.broadcast %cst_24 : f32 to vector<32x1xf32>
    %57 = arith.divf %55, %56 : vector<32x1xf32>
    %58 = vector.broadcast %57 : vector<32x1xf32> to vector<32x16xf32>
    %59 = arith.subf %53, %58 : vector<32x16xf32>
    %60 = arith.mulf %59, %59 : vector<32x16xf32>
    %cst_25 = arith.constant dense<0.000000e+00> : vector<32xf32>
    %61 = vector.multi_reduction <add>, %60, %cst_25 [1] : vector<32x16xf32> to vector<32xf32>
    %62 = vector.shape_cast %61 : vector<32xf32> to vector<32x1xf32>
    %cst_26 = arith.constant 1.600000e+01 : f32
    %63 = vector.broadcast %cst_26 : f32 to vector<32x1xf32>
    %64 = arith.divf %62, %63 : vector<32x1xf32>
    %cst_27 = arith.constant 9.99999974E-6 : f32
    %65 = vector.broadcast %cst_27 : f32 to vector<32x1xf32>
    %66 = arith.addf %64, %65 : vector<32x1xf32>
    %67 = math.rsqrt %66 : vector<32x1xf32>
    %68 = vector.broadcast %67 : vector<32x1xf32> to vector<32x16xf32>
    %69 = arith.mulf %59, %68 : vector<32x16xf32>
    %cst_28 = arith.constant 0.000000e+00 : f32
    %70 = vector.broadcast %cst_28 : f32 to vector<32x16xf32>
    %71 = arith.maximumf %69, %70 : vector<32x16xf32>
    %72 = vector.extract_strided_slice %71 {offsets = [0, 1], sizes = [32, 1], strides = [1, 1]} : vector<32x16xf32> to vector<32x1xf32>
    %73 = vector.extract_strided_slice %71 {offsets = [0, 14], sizes = [32, 1], strides = [1, 1]} : vector<32x16xf32> to vector<32x1xf32>
    %74 = tpu.concatenate %72, %71, %73 in 1 : vector<32x1xf32>, vector<32x16xf32>, vector<32x1xf32> -> vector<32x18xf32>
    %75 = vector.extract_strided_slice %74 {offsets = [0, 0], sizes = [32, 16], strides = [1, 1]} : vector<32x18xf32> to vector<32x16xf32>
    %76 = vector.extract_strided_slice %74 {offsets = [0, 1], sizes = [32, 16], strides = [1, 1]} : vector<32x18xf32> to vector<32x16xf32>
    %77 = vector.extract_strided_slice %74 {offsets = [0, 2], sizes = [32, 16], strides = [1, 1]} : vector<32x18xf32> to vector<32x16xf32>
    %78 = tpu.concatenate %75, %76, %77 in 0 : vector<32x16xf32>, vector<32x16xf32>, vector<32x16xf32> -> vector<96x16xf32>
    %c0_29 = arith.constant 0 : index
    %c0_30 = arith.constant 0 : index
    %79 = vector.load %arg8[%c0_29, %c0_30] : memref<32x96xf32, #tpu.memory_space<vmem>>, vector<32x96xf32>
    %cst_31 = arith.constant dense<0.000000e+00> : vector<32x16xf32>
    %80 = tpu.matmul %79, %78, %cst_31 {dimension_numbers = #tpu.dot_dimension_numbers<[1], [0], [0], [1], [0, 0, 1, 1], [], []>} : vector<32x96xf32>, vector<96x16xf32>, vector<32x16xf32> -> vector<32x16xf32>
    %c0_32 = arith.constant 0 : index
    %c0_33 = arith.constant 0 : index
    %81 = vector.load %arg9[%c0_32, %c0_33] : memref<32x1xf32, #tpu.memory_space<vmem>>, vector<32x1xf32>
    %82 = vector.broadcast %81 : vector<32x1xf32> to vector<32x16xf32>
    %83 = arith.addf %80, %82 : vector<32x16xf32>
    %cst_34 = arith.constant dense<0.000000e+00> : vector<32xf32>
    %84 = vector.multi_reduction <add>, %83, %cst_34 [1] : vector<32x16xf32> to vector<32xf32>
    %85 = vector.shape_cast %84 : vector<32xf32> to vector<32x1xf32>
    %cst_35 = arith.constant 1.600000e+01 : f32
    %86 = vector.broadcast %cst_35 : f32 to vector<32x1xf32>
    %87 = arith.divf %85, %86 : vector<32x1xf32>
    %88 = vector.broadcast %87 : vector<32x1xf32> to vector<32x16xf32>
    %89 = arith.subf %83, %88 : vector<32x16xf32>
    %90 = arith.mulf %89, %89 : vector<32x16xf32>
    %cst_36 = arith.constant dense<0.000000e+00> : vector<32xf32>
    %91 = vector.multi_reduction <add>, %90, %cst_36 [1] : vector<32x16xf32> to vector<32xf32>
    %92 = vector.shape_cast %91 : vector<32xf32> to vector<32x1xf32>
    %cst_37 = arith.constant 1.600000e+01 : f32
    %93 = vector.broadcast %cst_37 : f32 to vector<32x1xf32>
    %94 = arith.divf %92, %93 : vector<32x1xf32>
    %cst_38 = arith.constant 9.99999974E-6 : f32
    %95 = vector.broadcast %cst_38 : f32 to vector<32x1xf32>
    %96 = arith.addf %94, %95 : vector<32x1xf32>
    %97 = math.rsqrt %96 : vector<32x1xf32>
    %98 = vector.broadcast %97 : vector<32x1xf32> to vector<32x16xf32>
    %99 = arith.mulf %89, %98 : vector<32x16xf32>
    %cst_39 = arith.constant 0.000000e+00 : f32
    %100 = vector.broadcast %cst_39 : f32 to vector<32x16xf32>
    %101 = arith.maximumf %99, %100 : vector<32x16xf32>
    %102 = arith.addf %101, %41 : vector<32x16xf32>
    %103 = vector.extract_strided_slice %102 {offsets = [0, 1], sizes = [32, 1], strides = [1, 1]} : vector<32x16xf32> to vector<32x1xf32>
    %104 = vector.extract_strided_slice %102 {offsets = [0, 14], sizes = [32, 1], strides = [1, 1]} : vector<32x16xf32> to vector<32x1xf32>
    %105 = tpu.concatenate %103, %102, %104 in 1 : vector<32x1xf32>, vector<32x16xf32>, vector<32x1xf32> -> vector<32x18xf32>
    %106 = vector.extract_strided_slice %105 {offsets = [0, 0], sizes = [32, 16], strides = [1, 1]} : vector<32x18xf32> to vector<32x16xf32>
    %107 = vector.extract_strided_slice %105 {offsets = [0, 1], sizes = [32, 16], strides = [1, 1]} : vector<32x18xf32> to vector<32x16xf32>
    %108 = vector.extract_strided_slice %105 {offsets = [0, 2], sizes = [32, 16], strides = [1, 1]} : vector<32x18xf32> to vector<32x16xf32>
    %109 = tpu.concatenate %106, %107, %108 in 0 : vector<32x16xf32>, vector<32x16xf32>, vector<32x16xf32> -> vector<96x16xf32>
    %c0_40 = arith.constant 0 : index
    %c0_41 = arith.constant 0 : index
    %110 = vector.load %arg10[%c0_40, %c0_41] : memref<32x96xf32, #tpu.memory_space<vmem>>, vector<32x96xf32>
    %cst_42 = arith.constant dense<0.000000e+00> : vector<32x16xf32>
    %111 = tpu.matmul %110, %109, %cst_42 {dimension_numbers = #tpu.dot_dimension_numbers<[1], [0], [0], [1], [0, 0, 1, 1], [], []>} : vector<32x96xf32>, vector<96x16xf32>, vector<32x16xf32> -> vector<32x16xf32>
    %c0_43 = arith.constant 0 : index
    %c0_44 = arith.constant 0 : index
    %112 = vector.load %arg11[%c0_43, %c0_44] : memref<32x1xf32, #tpu.memory_space<vmem>>, vector<32x1xf32>
    %113 = vector.broadcast %112 : vector<32x1xf32> to vector<32x16xf32>
    %114 = arith.addf %111, %113 : vector<32x16xf32>
    %cst_45 = arith.constant dense<0.000000e+00> : vector<32xf32>
    %115 = vector.multi_reduction <add>, %114, %cst_45 [1] : vector<32x16xf32> to vector<32xf32>
    %116 = vector.shape_cast %115 : vector<32xf32> to vector<32x1xf32>
    %cst_46 = arith.constant 1.600000e+01 : f32
    %117 = vector.broadcast %cst_46 : f32 to vector<32x1xf32>
    %118 = arith.divf %116, %117 : vector<32x1xf32>
    %119 = vector.broadcast %118 : vector<32x1xf32> to vector<32x16xf32>
    %120 = arith.subf %114, %119 : vector<32x16xf32>
    %121 = arith.mulf %120, %120 : vector<32x16xf32>
    %cst_47 = arith.constant dense<0.000000e+00> : vector<32xf32>
    %122 = vector.multi_reduction <add>, %121, %cst_47 [1] : vector<32x16xf32> to vector<32xf32>
    %123 = vector.shape_cast %122 : vector<32xf32> to vector<32x1xf32>
    %cst_48 = arith.constant 1.600000e+01 : f32
    %124 = vector.broadcast %cst_48 : f32 to vector<32x1xf32>
    %125 = arith.divf %123, %124 : vector<32x1xf32>
    %cst_49 = arith.constant 9.99999974E-6 : f32
    %126 = vector.broadcast %cst_49 : f32 to vector<32x1xf32>
    %127 = arith.addf %125, %126 : vector<32x1xf32>
    %128 = math.rsqrt %127 : vector<32x1xf32>
    %129 = vector.broadcast %128 : vector<32x1xf32> to vector<32x16xf32>
    %130 = arith.mulf %120, %129 : vector<32x16xf32>
    %cst_50 = arith.constant 0.000000e+00 : f32
    %131 = vector.broadcast %cst_50 : f32 to vector<32x16xf32>
    %132 = arith.maximumf %130, %131 : vector<32x16xf32>
    %133 = vector.extract_strided_slice %132 {offsets = [0, 1], sizes = [32, 1], strides = [1, 1]} : vector<32x16xf32> to vector<32x1xf32>
    %134 = vector.extract_strided_slice %132 {offsets = [0, 14], sizes = [32, 1], strides = [1, 1]} : vector<32x16xf32> to vector<32x1xf32>
    %135 = tpu.concatenate %133, %132, %134 in 1 : vector<32x1xf32>, vector<32x16xf32>, vector<32x1xf32> -> vector<32x18xf32>
    %136 = vector.extract_strided_slice %135 {offsets = [0, 0], sizes = [32, 16], strides = [1, 1]} : vector<32x18xf32> to vector<32x16xf32>
    %137 = vector.extract_strided_slice %135 {offsets = [0, 1], sizes = [32, 16], strides = [1, 1]} : vector<32x18xf32> to vector<32x16xf32>
    %138 = vector.extract_strided_slice %135 {offsets = [0, 2], sizes = [32, 16], strides = [1, 1]} : vector<32x18xf32> to vector<32x16xf32>
    %139 = tpu.concatenate %136, %137, %138 in 0 : vector<32x16xf32>, vector<32x16xf32>, vector<32x16xf32> -> vector<96x16xf32>
    %c0_51 = arith.constant 0 : index
    %c0_52 = arith.constant 0 : index
    %140 = vector.load %arg12[%c0_51, %c0_52] : memref<32x96xf32, #tpu.memory_space<vmem>>, vector<32x96xf32>
    %cst_53 = arith.constant dense<0.000000e+00> : vector<32x16xf32>
    %141 = tpu.matmul %140, %139, %cst_53 {dimension_numbers = #tpu.dot_dimension_numbers<[1], [0], [0], [1], [0, 0, 1, 1], [], []>} : vector<32x96xf32>, vector<96x16xf32>, vector<32x16xf32> -> vector<32x16xf32>
    %c0_54 = arith.constant 0 : index
    %c0_55 = arith.constant 0 : index
    %142 = vector.load %arg13[%c0_54, %c0_55] : memref<32x1xf32, #tpu.memory_space<vmem>>, vector<32x1xf32>
    %143 = vector.broadcast %142 : vector<32x1xf32> to vector<32x16xf32>
    %144 = arith.addf %141, %143 : vector<32x16xf32>
    %145 = tpu.iota {dimensions = array<i32: 0>} : vector<16x8xi32>
    %146 = tpu.iota {dimensions = array<i32: 1>} : vector<16x8xi32>
    %c2_i32 = arith.constant 2 : i32
    %147 = vector.broadcast %c2_i32 : i32 to vector<16x8xi32>
    %148 = arith.muli %146, %147 : vector<16x8xi32>
    %149 = arith.cmpi eq, %145, %148 : vector<16x8xi32>
    %150 = arith.extui %149 : vector<16x8xi1> to vector<16x8xi32>
    %151 = arith.sitofp %150 : vector<16x8xi32> to vector<16x8xf32>
    %c2_i32_56 = arith.constant 2 : i32
    %152 = vector.broadcast %c2_i32_56 : i32 to vector<16x8xi32>
    %153 = arith.muli %146, %152 : vector<16x8xi32>
    %154 = arith.cmpi sge, %145, %153 : vector<16x8xi32>
    %c2_i32_57 = arith.constant 2 : i32
    %155 = vector.broadcast %c2_i32_57 : i32 to vector<16x8xi32>
    %156 = arith.muli %146, %155 : vector<16x8xi32>
    %c2_i32_58 = arith.constant 2 : i32
    %157 = vector.broadcast %c2_i32_58 : i32 to vector<16x8xi32>
    %158 = arith.addi %156, %157 : vector<16x8xi32>
    %159 = arith.cmpi slt, %145, %158 : vector<16x8xi32>
    %160 = arith.andi %154, %159 : vector<16x8xi1>
    %161 = arith.extui %160 : vector<16x8xi1> to vector<16x8xi32>
    %162 = arith.sitofp %161 : vector<16x8xi32> to vector<16x8xf32>
    %163 = vector.extract_strided_slice %146 {offsets = [0, 0], sizes = [1, 8], strides = [1, 1]} : vector<16x8xi32> to vector<1x8xi32>
    %c2_i32_59 = arith.constant 2 : i32
    %164 = vector.broadcast %c2_i32_59 : i32 to vector<1x8xi32>
    %165 = arith.muli %163, %164 : vector<1x8xi32>
    %c16_i32 = arith.constant 16 : i32
    %166 = vector.broadcast %c16_i32 : i32 to vector<1x8xi32>
    %167 = arith.subi %166, %165 : vector<1x8xi32>
    %c2_i32_60 = arith.constant 2 : i32
    %168 = vector.broadcast %c2_i32_60 : i32 to vector<1x8xi32>
    %169 = arith.minsi %168, %167 : vector<1x8xi32>
    %170 = arith.sitofp %169 : vector<1x8xi32> to vector<1x8xf32>
    %cst_61 = arith.constant dense<0.000000e+00> : vector<32x8xf32>
    %171 = tpu.matmul %144, %151, %cst_61 {dimension_numbers = #tpu.dot_dimension_numbers<[1], [0], [0], [1], [0, 0, 1, 1], [], []>} : vector<32x16xf32>, vector<16x8xf32>, vector<32x8xf32> -> vector<32x8xf32>
    %172 = vector.broadcast %170 : vector<1x8xf32> to vector<16x8xf32>
    %173 = arith.divf %162, %172 : vector<16x8xf32>
    %cst_62 = arith.constant dense<0.000000e+00> : vector<32x8xf32>
    %174 = tpu.matmul %102, %173, %cst_62 {dimension_numbers = #tpu.dot_dimension_numbers<[1], [0], [0], [1], [0, 0, 1, 1], [], []>} : vector<32x16xf32>, vector<16x8xf32>, vector<32x8xf32> -> vector<32x8xf32>
    %cst_63 = arith.constant dense<0.000000e+00> : vector<32xf32>
    %175 = vector.multi_reduction <add>, %171, %cst_63 [1] : vector<32x8xf32> to vector<32xf32>
    %176 = vector.shape_cast %175 : vector<32xf32> to vector<32x1xf32>
    %cst_64 = arith.constant 8.000000e+00 : f32
    %177 = vector.broadcast %cst_64 : f32 to vector<32x1xf32>
    %178 = arith.divf %176, %177 : vector<32x1xf32>
    %179 = vector.broadcast %178 : vector<32x1xf32> to vector<32x8xf32>
    %180 = arith.subf %171, %179 : vector<32x8xf32>
    %181 = arith.mulf %180, %180 : vector<32x8xf32>
    %cst_65 = arith.constant dense<0.000000e+00> : vector<32xf32>
    %182 = vector.multi_reduction <add>, %181, %cst_65 [1] : vector<32x8xf32> to vector<32xf32>
    %183 = vector.shape_cast %182 : vector<32xf32> to vector<32x1xf32>
    %cst_66 = arith.constant 8.000000e+00 : f32
    %184 = vector.broadcast %cst_66 : f32 to vector<32x1xf32>
    %185 = arith.divf %183, %184 : vector<32x1xf32>
    %cst_67 = arith.constant 9.99999974E-6 : f32
    %186 = vector.broadcast %cst_67 : f32 to vector<32x1xf32>
    %187 = arith.addf %185, %186 : vector<32x1xf32>
    %188 = math.rsqrt %187 : vector<32x1xf32>
    %189 = vector.broadcast %188 : vector<32x1xf32> to vector<32x8xf32>
    %190 = arith.mulf %180, %189 : vector<32x8xf32>
    %cst_68 = arith.constant 0.000000e+00 : f32
    %191 = vector.broadcast %cst_68 : f32 to vector<32x8xf32>
    %192 = arith.maximumf %190, %191 : vector<32x8xf32>
    %193 = arith.addf %192, %174 : vector<32x8xf32>
    %c0_69 = arith.constant 0 : index
    %c0_70 = arith.constant 0 : index
    %194 = vector.load %arg14[%c0_69, %c0_70] : memref<16x32xf32, #tpu.memory_space<vmem>>, vector<16x32xf32>
    %cst_71 = arith.constant dense<0.000000e+00> : vector<16x8xf32>
    %195 = tpu.matmul %194, %193, %cst_71 {dimension_numbers = #tpu.dot_dimension_numbers<[1], [0], [0], [1], [0, 0, 1, 1], [], []>} : vector<16x32xf32>, vector<32x8xf32>, vector<16x8xf32> -> vector<16x8xf32>
    %c0_72 = arith.constant 0 : index
    %c0_73 = arith.constant 0 : index
    %196 = vector.load %arg15[%c0_72, %c0_73] : memref<16x1xf32, #tpu.memory_space<vmem>>, vector<16x1xf32>
    %197 = vector.broadcast %196 : vector<16x1xf32> to vector<16x8xf32>
    %198 = arith.addf %195, %197 : vector<16x8xf32>
    %c0_74 = arith.constant 0 : index
    %c0_75 = arith.constant 0 : index
    %c0_76 = arith.constant 0 : index
    %199 = vector.load %arg16[%c0_74, %c0_75, %c0_76] : memref<1x16x8xf32, #tpu.memory_space<vmem>>, vector<1x16x8xf32>
    %200 = vector.shape_cast %199 : vector<1x16x8xf32> to vector<16x8xf32>
    %201 = vector.shape_cast %198 : vector<16x8xf32> to vector<1x16x8xf32>
    tpu.vector_store %arg16[%c0_74, %c0_75, %c0_76], %201 {strides = array<i32>} : memref<1x16x8xf32, #tpu.memory_space<vmem>>, vector<1x16x8xf32>,
    return
  }
  func.func @transform_0(%arg0: i32) -> (i32, i32, i32) {
    %c0_i32 = arith.constant 0 : i32
    %c0_i32_0 = arith.constant 0 : i32
    %c0_i32_1 = arith.constant 0 : i32
    return %arg0, %c0_i32, %c0_i32_0 : i32, i32, i32
  }
  func.func @transform_1(%arg0: i32) -> (i32, i32) {
    %c0_i32 = arith.constant 0 : i32
    %c0_i32_0 = arith.constant 0 : i32
    %c0_i32_1 = arith.constant 0 : i32
    return %c0_i32, %c0_i32_0 : i32, i32
  }
  func.func @transform_2(%arg0: i32) -> (i32, i32) {
    %c0_i32 = arith.constant 0 : i32
    %c0_i32_0 = arith.constant 0 : i32
    %c0_i32_1 = arith.constant 0 : i32
    return %c0_i32, %c0_i32_0 : i32, i32
  }
  func.func @transform_3(%arg0: i32) -> (i32, i32) {
    %c0_i32 = arith.constant 0 : i32
    %c0_i32_0 = arith.constant 0 : i32
    %c0_i32_1 = arith.constant 0 : i32
    return %c0_i32, %c0_i32_0 : i32, i32
  }
  func.func @transform_4(%arg0: i32) -> (i32, i32) {
    %c0_i32 = arith.constant 0 : i32
    %c0_i32_0 = arith.constant 0 : i32
    %c0_i32_1 = arith.constant 0 : i32
    return %c0_i32, %c0_i32_0 : i32, i32
  }
  func.func @transform_5(%arg0: i32) -> (i32, i32) {
    %c0_i32 = arith.constant 0 : i32
    %c0_i32_0 = arith.constant 0 : i32
    %c0_i32_1 = arith.constant 0 : i32
    return %c0_i32, %c0_i32_0 : i32, i32
  }
  func.func @transform_6(%arg0: i32) -> (i32, i32) {
    %c0_i32 = arith.constant 0 : i32
    %c0_i32_0 = arith.constant 0 : i32
    %c0_i32_1 = arith.constant 0 : i32
    return %c0_i32, %c0_i32_0 : i32, i32
  }
  func.func @transform_7(%arg0: i32) -> (i32, i32) {
    %c0_i32 = arith.constant 0 : i32
    %c0_i32_0 = arith.constant 0 : i32
    %c0_i32_1 = arith.constant 0 : i32
    return %c0_i32, %c0_i32_0 : i32, i32
  }
  func.func @transform_8(%arg0: i32) -> (i32, i32) {
    %c0_i32 = arith.constant 0 : i32
    %c0_i32_0 = arith.constant 0 : i32
    %c0_i32_1 = arith.constant 0 : i32
    return %c0_i32, %c0_i32_0 : i32, i32
  }
  func.func @transform_9(%arg0: i32) -> (i32, i32) {
    %c0_i32 = arith.constant 0 : i32
    %c0_i32_0 = arith.constant 0 : i32
    %c0_i32_1 = arith.constant 0 : i32
    return %c0_i32, %c0_i32_0 : i32, i32
  }
  func.func @transform_10(%arg0: i32) -> (i32, i32) {
    %c0_i32 = arith.constant 0 : i32
    %c0_i32_0 = arith.constant 0 : i32
    %c0_i32_1 = arith.constant 0 : i32
    return %c0_i32, %c0_i32_0 : i32, i32
  }
  func.func @transform_11(%arg0: i32) -> (i32, i32) {
    %c0_i32 = arith.constant 0 : i32
    %c0_i32_0 = arith.constant 0 : i32
    %c0_i32_1 = arith.constant 0 : i32
    return %c0_i32, %c0_i32_0 : i32, i32
  }
  func.func @transform_12(%arg0: i32) -> (i32, i32) {
    %c0_i32 = arith.constant 0 : i32
    %c0_i32_0 = arith.constant 0 : i32
    %c0_i32_1 = arith.constant 0 : i32
    return %c0_i32, %c0_i32_0 : i32, i32
  }
  func.func @transform_13(%arg0: i32) -> (i32, i32) {
    %c0_i32 = arith.constant 0 : i32
    %c0_i32_0 = arith.constant 0 : i32
    %c0_i32_1 = arith.constant 0 : i32
    return %c0_i32, %c0_i32_0 : i32, i32
  }
  func.func @transform_14(%arg0: i32) -> (i32, i32) {
    %c0_i32 = arith.constant 0 : i32
    %c0_i32_0 = arith.constant 0 : i32
    %c0_i32_1 = arith.constant 0 : i32
    return %c0_i32, %c0_i32_0 : i32, i32
  }
  func.func @transform_15(%arg0: i32) -> (i32, i32, i32) {
    %c0_i32 = arith.constant 0 : i32
    %c0_i32_0 = arith.constant 0 : i32
    %c0_i32_1 = arith.constant 0 : i32
    return %arg0, %c0_i32, %c0_i32_0 : i32, i32, i32
  }
}

</mosaic_0001>

<bundles_post_ra>
// kernel: tpu_custom_call.1
= control target key start
LH: loop header
LB: loop body
LE: loop exit
PB: predicated region body
PF: predicated region fallthrough
CT: control target
= control target key end

     0   :  { %s3061_s18 = smov 0   ;;  %s3466_s0 = inlined_call_operand.vmem [shape: f32[2,4,16], index: 0, kind: input, shape index: {}]   ;;  %s3467_s1 = inlined_call_operand.vmem [shape: f32[32,16], index: 1, kind: input, shape index: {}]   ;;  %s3468_s2 = inlined_call_operand.vmem [shape: f32[32,1], index: 2, kind: input, shape index: {}]   ;;  %s3469_s3 = inlined_call_operand.vmem [shape: f32[32,36], index: 3, kind: input, shape index: {}]   ;;  %s3470_s4 = inlined_call_operand.vmem [shape: f32[32,1], index: 4, kind: input, shape index: {}]   ;;  %s3471_s5 = inlined_call_operand.vmem [shape: f32[32,96], index: 5, kind: input, shape index: {}]   ;;  %s3472_s6 = inlined_call_operand.vmem [shape: f32[32,1], index: 6, kind: input, shape index: {}]   ;;  %s3473_s7 = inlined_call_operand.vmem [shape: f32[32,96], index: 7, kind: input, shape index: {}]   ;;  %s3474_s8 = inlined_call_operand.vmem [shape: f32[32,1], index: 8, kind: input, shape index: {}]   ;;  %s3475_s9 = inlined_call_operand.vmem [shape: f32[32,96], index: 9, kind: input, shape index: {}]   ;;  %s3476_s10 = inlined_call_operand.vmem [shape: f32[32,1], index: 10, kind: input, shape index: {}]   ;;  %s3477_s11 = inlined_call_operand.vmem [shape: f32[32,96], index: 11, kind: input, shape index: {}]   ;;  %s3478_s12 = inlined_call_operand.vmem [shape: f32[32,1], index: 12, kind: input, shape index: {}]   ;;  %s3479_s13 = inlined_call_operand.vmem [shape: f32[16,32], index: 13, kind: input, shape index: {}]   ;;  %s3480_s14 = inlined_call_operand.vmem [shape: f32[16,1], index: 14, kind: input, shape index: {}]   ;;  %s3481_s15 = inlined_call_operand.vmem [shape: f32[2,16,8], index: 15, kind: output, shape index: {}]  }
   0x1 LB: > { %s2251_s19 = sadd.s32 4294967295, %s2969_s18   ;;  %p2255_p0 = scmp.ge.s32.totalorder %s2969_s18, 1  ;;  %s2969_s18 = sphi %s3061_s18, %s25_s18  }
   0x2   : > { %p436_p1 = scmp.lt.s32.totalorder %s2969_s18, 3 }
   0x4   : > { %p437_p2 = pnand %p2255_p0, %p436_p1 }
   0x5   : > { %p483_p3 = scmp.lt.s32.totalorder (!%p437_p2), %s2251_s19, 1  ;;  %s2971_s24 = smov (!%p437_p2), 126   ;;  %vm503_vm0 = vcmask (!%p437_p2), 7168   ;;  %vm505_vm1 = vcmask (!%p437_p2), 15360   ;;  %vm507_vm2 = vcmask (!%p437_p2), 146432   ;;  %v523_v5 = vld [vmem:[%s3467_s1] sm:$0xff] (!%p437_p2) }
   0x6   : > { %440 = sbr.rel (%p437_p2) target bundleno = 4618 (0x120a), region = 80  ;;  %s2972_s25 = smov (!%p437_p2), 4   ;;  %vm551_vm3 = vcmask (!%p437_p2), 130048   ;;  %v527_v9 = vld [vmem:[%s3468_s2] sm:$0xff] (!%p437_p2)  ;;  %v2975_v10 = vmov (!%p437_p2), 0   ;;  %v528_v11 = vld [vmem:[%s3468_s2 + $0x8] sm:$0xff] (!%p437_p2) }
   0x7   : > { %s2973_s26 = smov (!%p437_p2), 2   ;;  %2404 = vmatprep.mubr.msk.f32.mxu0 (!%p437_p2), %vm551_vm3, %v523_v5  ;;  %s2974_s29 = smov (!%p437_p2), 127   ;;  %2720 = vset.pattern.permute.xlu1 (!%p437_p2), %v2975_v10  ;;  %v530_v12 = vld [vmem:[%s3468_s2 + $0x18] sm:$0xff] (!%p437_p2)  ;;  %v529_v13 = vld [vmem:[%s3468_s2 + $0x10] sm:$0xff] (!%p437_p2)  ;;  %v658_v14 = vld [vmem:[%s3470_s4 + $0x8] sm:$0xff] (!%p437_p2)  ;;  %vm520_vm4 = vcmask (!%p437_p2), 1043456  }
   0x8   : > { %2719 = vset.pattern.permute.xlu0 (!%p437_p2), %v2975_v10  ;;  %s2976_s17 = smov (!%p437_p2), 125   ;;  %v657_v15 = vld [vmem:[%s3470_s4] sm:$0xff] (!%p437_p2)  ;;  %v660_v16 = vld [vmem:[%s3470_s4 + $0x18] sm:$0xff] (!%p437_p2)  ;;  %v659_v17 = vld [vmem:[%s3470_s4 + $0x10] sm:$0xff] (!%p437_p2)  ;;  %vm681_vm5 = vcmask (!%p437_p2), 293888   ;;  %s2977_s27 = smov (!%p437_p2), 1  }
   0x9   : > { %v524_v24 = vld [vmem:[%s3467_s1 + $0x8] sm:$0xff] (!%p437_p2)  ;;  %v525_v25 = vld [vmem:[%s3467_s1 + $0x10] sm:$0xff] (!%p437_p2)  ;;  %v526_v26 = vld [vmem:[%s3467_s1 + $0x18] sm:$0xff] (!%p437_p2)  ;;  %s2978_s28 = smov (!%p437_p2), 3   ;;  %vm882_vm6 = vcmask (!%p437_p2), 138240   ;;  %vm943_vm7 = vcmask (!%p437_p2), 785408  }
   0xa   : > { %v653_v27 = vld [vmem:[%s3469_s3] sm:$0xff] (!%p437_p2)  ;;  %v654_v46 = vld [vmem:[%s3469_s3 + $0x8] sm:$0xff] (!%p437_p2)  ;;  %v655_v47 = vld [vmem:[%s3469_s3 + $0x10] sm:$0xff] (!%p437_p2) }
   0xb   : > { %2420 = vmatprep.mubr.msk.f32.mxu1 (!%p437_p2), %vm681_vm5, %v653_v27  ;;  %v656_v48 = vld [vmem:[%s3469_s3 + $0x18] sm:$0xff] (!%p437_p2) }
   0xd   : > { %s3483_s19 = smov (!%p483_p3, %s2251_s19), 1 }
   0xe   : > { %s2256_s20 = sshll.u32 %s3483_s19, 2  ;;  %s2302_s16 = sshll.u32 %s3483_s19, 4 }
   0xf   : > { %s486_s23 = scalar_lea.vmem %s3466_s0, %s2256_s20 }
  0x10   : > { %v3075_v0 = vld [vmem:[%s486_s23] sm:$0xf] }
  0x11   : > { %494 = vrot.lane.b32.xlu0 %v3075_v0, %s2971_s24  ;;  %500 = vrot.lane.b32.xlu1 %v3075_v0, %s2972_s25 }
  0x15   : > { %497 = vrot.lane.b32.xlu0 %v3075_v0, %s2973_s26 }
  0x83   : > { %v495_v1 = vpop.permute.xlu0 %494  ;;  %v501_v2 = vpop.permute.xlu1 %500 }
  0x84   : > { %v504_v3 = vsel %vm503_vm0, %v495_v1, %v3075_v0 }
  0x87   : > { %v498_v4 = vpop.permute.xlu0 %497 }
  0x88   : > { %v506_v6 = vsel %vm505_vm1, %v504_v3, %v498_v4 }
  0x89   : > { %v508_v7 = vsel %vm507_vm2, %v506_v6, %v501_v2  ;;  %vm2036_vm2 = vcmask 64512  }
  0x8a   : > { %514 = vrot.lane.b32.xlu0 %v508_v7, %s2971_s24  ;;  %v510_v8 = vrot.slane %v508_v7, 4 }
  0x8c   : > { %511 = vrot.lane.b32.xlu1 %v510_v8, %s2974_s29 }
  0x8e   : > { %533 = vperm.xlu0 %2719, %v527_v9  }
  0x90   : > { %517 = vrot.lane.b32.xlu1 %v510_v8, %s2976_s17 }
  0x92   : > { %548 = vperm.xlu0 %2719, %v530_v12  }
  0x94   : > { %538 = vperm.xlu1 %2720, %v528_v11  }
  0x96   : > { %668 = vperm.xlu0 %2719, %v658_v14  }
  0x98   : > { %543 = vperm.xlu1 %2720, %v529_v13  }
  0x9a   : > { %678 = vperm.xlu0 %2719, %v660_v16  }
  0x9c   : > { %663 = vperm.xlu1 %2720, %v657_v15  }
  0xa0   : > { %673 = vperm.xlu1 %2720, %v659_v17  }
  0xfc   : > { %v515_v19 = vpop.permute.xlu0 %514 }
  0xfe   : > { %v512_v18 = vpop.permute.xlu1 %511 }
  0xff   : > { %v521_v21 = vsel %vm520_vm4, %v508_v7, %v512_v18 }
 0x102   : > { %v518_v20 = vpop.permute.xlu1 %517 }
 0x103   : > { %v522_v22 = vsel %vm520_vm4, %v515_v19, %v518_v20 }
 0x104   : > { %v2577_v23 = vpack.c.bf16 %v522_v22, %v521_v21 }
 0x106   : > { %2578 = vmatprep.subr.bf16.mxu0 %v2577_v23 }
 0x107   : > { %2580 = vmatpush3.bf16.msra.mxu0 %v2577_v23 }
 0x10a   : > { %2405 = vmatmul.mubr.msk.f32.vlgmr.msra.gmra.mrb[0].mxu0 %vm551_vm3, %v524_v24 }
 0x10b   : > { %2407 = vmatprep.mubr.msk.f32.mxu0 %vm551_vm3, %v525_v25 }
 0x10d   : > { %v534_v28 = vpop.permute.xlu0 %533 }
 0x10e   : > { %2408 = vmatmul.mubr.msk.f32.gmra.mrb[2].mxu0 %vm551_vm3, %v526_v26 }
 0x111   : > { %v549_v35 = vpop.permute.xlu0 %548 }
 0x113   : > { %v539_v29 = vpop.permute.xlu1 %538 }
 0x115   : > { %v669_v49 = vpop.permute.xlu0 %668 }
 0x117   : > { %v544_v38 = vpop.permute.xlu1 %543 }
 0x119   : > { %v679_v56 = vpop.permute.xlu0 %678 }
 0x11b   : > { %v664_v50 = vpop.permute.xlu1 %663 }
 0x11f   : > { %v674_v59 = vpop.permute.xlu1 %673 }
 0x1dd   : > { %v2406_v30 = vpop.f32.mrb[0].mxu0 }
 0x1de   : > { %v636_v31 = vadd.f32 %v2406_v30, %v539_v29  ;;  %v630_v32 = vpop.f32.mrb[1].mxu0 }
 0x1df   : > { %v631_v33 = vadd.f32 %v630_v32, %v534_v28 }
 0x1e0   : > { %v650_v34 = vmax.f32 %v636_v31, 0.0 }
 0x1e1   : > { %v649_v36 = vmax.f32 %v631_v33, 0.0  ;;  %v2409_v37 = vpop.f32.mrb[2].mxu0 }
 0x1e2   : > { %v646_v39 = vadd.f32 %v2409_v37, %v549_v35  ;;  %v640_v40 = vpop.f32.mrb[3].mxu0 }
 0x1e3   : > { %v641_v41 = vadd.f32 %v640_v40, %v544_v38  ;;  %v2581_v42 = vpack.c.bf16 %v650_v34, %v649_v36 }
 0x1e4   : > { %v652_v43 = vmax.f32 %v646_v39, 0.0 }
 0x1e5   : > { %v651_v44 = vmax.f32 %v641_v41, 0.0  ;;  %2582 = vmatprep.subr.bf16.mxu1 %v2581_v42 }
 0x1e6   : > { %2584 = vmatpush3.bf16.msra.mxu1 %v2581_v42 }
 0x1e7   : > { %v2585_v45 = vpack.c.bf16 %v652_v43, %v651_v44 }
 0x1e9   : > { %2586 = vmatprep.subr.bf16.mxu1 %v2585_v45 }
 0x1ea   : > { %2588 = vmatpush3.bf16.msra.mxu1 %v2585_v45 }
 0x1eb   : > { %2418 = vmatprep.subr.msk.mxu1 %vm520_vm4, %v3075_v0 }
 0x1ee   : > { %2419 = vmatpush3.msk.msra.mxu1 %vm520_vm4, %v3075_v0 }
 0x1ef   : > { %2421 = vmatmul.mubr.msk.f32.vlgmr.msra.gmra.mrb[0].mxu1 %vm681_vm5, %v654_v46 }
 0x1f0   : > { %2423 = vmatprep.mubr.msk.f32.mxu1 %vm681_vm5, %v655_v47 }
 0x1f3   : > { %2424 = vmatmul.mubr.msk.f32.gmra.mrb[2].mxu1 %vm681_vm5, %v656_v48 }
 0x2c2   : > { %v2422_v51 = vpop.f32.mrb[0].mxu1 }
 0x2c3   : > { %v768_v52 = vadd.f32 %v2422_v51, %v669_v49  ;;  %v762_v53 = vpop.f32.mrb[1].mxu1 }
 0x2c4   : > { %v763_v54 = vadd.f32 %v762_v53, %v664_v50 }
 0x2c5   : > { %v784_v55 = vsel %vm551_vm3, %v768_v52, 0.0 }
 0x2c6   : > { %785 = vadd.xlane.f32.xlu0 %v784_v55  ;;  %v2425_v57 = vpop.f32.mrb[2].mxu1  ;;  %v781_v58 = vsel %vm551_vm3, %v763_v54, 0.0 }
 0x2c7   : > { %v778_v60 = vadd.f32 %v2425_v57, %v679_v56  ;;  %v772_v61 = vpop.f32.mrb[3].mxu1  ;;  %782 = vadd.xlane.f32.xlu1 %v781_v58 }
 0x2c8   : > { %v773_v62 = vadd.f32 %v772_v61, %v674_v59 }
 0x2c9   : > { %v790_v63 = vsel %vm551_vm3, %v778_v60, 0.0 }
 0x2ca   : > { %v787_v0 = vsel %vm551_vm3, %v773_v62, 0.0 }
 0x2cb   : > { %791 = vadd.xlane.f32.xlu1 %v790_v63  ;;  %788 = vadd.xlane.f32.xlu0 %v787_v0 }
 0x353   : > { %v786_v1 = vpop.xlane.xlu0 %785 }
 0x354   : > { %v795_v2 = vmul.f32 0.0625, %v786_v1  ;;  %v783_v3 = vpop.xlane.xlu1 %782 }
 0x355   : > { %v794_v4 = vmul.f32 0.0625, %v783_v3 }
 0x356   : > { %v799_v5 = vsub.f32 %v768_v52, %v795_v2 }
 0x357   : > { %v798_v6 = vsub.f32 %v763_v54, %v794_v4 }
 0x358   : > { %v789_v7 = vpop.xlane.xlu0 %788  ;;  %v792_v8 = vpop.xlane.xlu1 %791  ;;  %v803_v9 = vmul.f32 %v799_v5, %v799_v5 }
 0x359   : > { %v796_v10 = vmul.f32 0.0625, %v789_v7  ;;  %v797_v11 = vmul.f32 0.0625, %v792_v8  ;;  %v802_v12 = vmul.f32 %v798_v6, %v798_v6 }
 0x35a   : > { %v809_v13 = vsel %vm551_vm3, %v803_v9, 0.0 }
 0x35b   : > { %v800_v14 = vsub.f32 %v773_v62, %v796_v10  ;;  %v801_v15 = vsub.f32 %v778_v60, %v797_v11  ;;  %810 = vadd.xlane.f32.xlu1 %v809_v13  ;;  %v806_v16 = vsel %vm551_vm3, %v802_v12, 0.0  ;;  %v919_v13 = vld [vmem:[%s3472_s6] sm:$0xff] }
 0x35c   : > { %807 = vadd.xlane.f32.xlu0 %v806_v16  ;;  %v920_v16 = vld [vmem:[%s3472_s6 + $0x8] sm:$0xff] }
 0x35d   : > { %v804_v17 = vmul.f32 %v800_v14, %v800_v14  ;;  %v805_v18 = vmul.f32 %v801_v15, %v801_v15 }
 0x35f   : > { %v812_v19 = vsel %vm551_vm3, %v804_v17, 0.0  ;;  %v815_v20 = vsel %vm551_vm3, %v805_v18, 0.0  ;;  %v922_v17 = vld [vmem:[%s3472_s6 + $0x18] sm:$0xff] }
 0x360   : > { %813 = vadd.xlane.f32.xlu0 %v812_v19  ;;  %816 = vadd.xlane.f32.xlu1 %v815_v20 }
 0x3e8   : > { %v811_v21 = vpop.xlane.xlu1 %810 }
 0x3e9   : > { %v819_v22 = vmul.f32 0.0625, %v811_v21  ;;  %v808_v23 = vpop.xlane.xlu0 %807 }
 0x3ea   : > { %v818_v24 = vmul.f32 0.0625, %v808_v23 }
 0x3eb   : > { %v823_v25 = vadd.f32 1e-05, %v819_v22 }
 0x3ec   : > { %v822_v26 = vadd.f32 1e-05, %v818_v24 }
 0x3ed   : > { %2921 = vrsqrt.f32 %v823_v25  ;;  %v814_v27 = vpop.xlane.xlu0 %813  ;;  %v817_v28 = vpop.xlane.xlu1 %816 }
 0x3ee   : > { %2923 = vrsqrt.f32 %v822_v26  ;;  %v820_v29 = vmul.f32 0.0625, %v814_v27  ;;  %v821_v30 = vmul.f32 0.0625, %v817_v28 }
 0x3f0   : > { %v824_v31 = vadd.f32 1e-05, %v820_v29  ;;  %v825_v32 = vadd.f32 1e-05, %v821_v30 }
 0x3f2   : > { %2925 = vrsqrt.f32 %v824_v31 }
 0x3f3   : > { %2927 = vrsqrt.f32 %v825_v32 }
 0x3f7   : > { %v2922_v33 = vpop.eup %2921 }
 0x3f8   : > { %v2924_v34 = vpop.eup %2923  ;;  %v3155_v35 = vmul.f32 %v2922_v33, %v799_v5 }
 0x3f9   : > { %v3157_v36 = vmul.f32 %v2924_v34, %v798_v6  ;;  %v916_v34 = vld [vmem:[%s3471_s5 + $0x8] sm:$0xff] }
 0x3fa   : > { %v835_v37 = vmax.f32 %v3155_v35, 0.0 }
 0x3fb   : > { %v834_v38 = vmax.f32 %v3157_v36, 0.0 }
 0x3fc   : > { %v2926_v39 = vpop.eup %2925 }
 0x3fd   : > { %v2928_v40 = vpop.eup %2927  ;;  %v2726_v41 = vpack.i.bf16 %v835_v37, %v834_v38  ;;  %v3165_v42 = vmul.f32 %v2926_v39, %v800_v14  ;;  %v915_v14 = vld [vmem:[%s3471_s5] sm:$0xff]  ;;  %v917_v39 = vld [vmem:[%s3471_s5 + $0x10] sm:$0xff] }
 0x3fe   : > { %v3167_v43 = vmul.f32 %v2928_v40, %v801_v15  ;;  %2450 = vmatprep.mubr.msk.f32.mxu0 %vm943_vm7, %v915_v14  ;;  %v921_v15 = vld [vmem:[%s3472_s6 + $0x10] sm:$0xff]  ;;  %v918_v40 = vld [vmem:[%s3471_s5 + $0x18] sm:$0xff] }
 0x3ff   : > { %2727 = vrot.lane.b32.xlu1 %v2726_v41, %s2977_s27  ;;  %2722 = vrot.lane.b32.xlu0 %v2726_v41, %s2974_s29  ;;  %v836_v44 = vmax.f32 %v3165_v42, 0.0 }
 0x400   : > { %v837_v45 = vmax.f32 %v3167_v43, 0.0 }
 0x402   : > { %v2736_v46 = vpack.i.bf16 %v837_v45, %v836_v44 }
 0x403   : > { %2732 = vrot.lane.b32.xlu1 %v2726_v41, %s2978_s28 }
 0x404   : > { %2737 = vrot.lane.b32.xlu0 %v2736_v46, %s2974_s29 }
 0x407   : > { %2742 = vrot.lane.b32.xlu1 %v2736_v46, %s2977_s27 }
 0x408   : > { %2747 = vrot.lane.b32.xlu0 %v2736_v46, %s2978_s28 }
 0x471   : > { %v2723_v47 = vpop.permute.xlu0 %2722  ;;  %v2728_v48 = vpop.permute.xlu1 %2727 }
 0x472   : > { %v2725_v49 = vunpack.i.h.bf16 %v2723_v47  ;;  %v2724_v50 = vunpack.i.l.bf16 %v2723_v47  ;;  %v2730_v51 = vunpack.i.h.bf16 %v2728_v48  ;;  %v2729_v52 = vunpack.i.l.bf16 %v2728_v48 }
 0x474   : > { %v879_v57 = vsel %vm503_vm0, %v2725_v49, %v2730_v51  ;;  %v878_v58 = vsel %vm503_vm0, %v2724_v50, %v2729_v52 }
 0x475   : > { %v2733_v53 = vpop.permute.xlu1 %2732 }
 0x476   : > { %v2738_v54 = vpop.permute.xlu0 %2737  ;;  %v2735_v55 = vunpack.i.h.bf16 %v2733_v53  ;;  %v2734_v56 = vunpack.i.l.bf16 %v2733_v53 }
 0x477   : > { %v2740_v0 = vunpack.i.h.bf16 %v2738_v54  ;;  %v2739_v1 = vunpack.i.l.bf16 %v2738_v54 }
 0x478   : > { %v883_v59 = vsel %vm882_vm6, %v878_v58, %v2734_v56  ;;  %v884_v60 = vsel %vm882_vm6, %v879_v57, %v2735_v55 }
 0x479   : > { %v2743_v61 = vpop.permute.xlu1 %2742  ;;  %v2751_v62 = vpack.i.bf16 %v884_v60, %v883_v59  ;;  %v2589_v63 = vpack.c.bf16 %v884_v60, %v883_v59 }
 0x47a   : > { %v2748_v2 = vpop.permute.xlu0 %2747  ;;  %v2745_v3 = vunpack.i.h.bf16 %v2743_v61  ;;  %v2744_v4 = vunpack.i.l.bf16 %v2743_v61 }
 0x47b   : > { %v2750_v5 = vunpack.i.h.bf16 %v2748_v2  ;;  %v2749_v6 = vunpack.i.l.bf16 %v2748_v2  ;;  %2752 = vrot.lane.b32.xlu1 %v2751_v62, %s2974_s29  ;;  %2590 = vmatprep.subr.bf16.mxu0 %v2589_v63 }
 0x47c   : > { %v881_v7 = vsel %vm503_vm0, %v2740_v0, %v2745_v3  ;;  %v880_v8 = vsel %vm503_vm0, %v2739_v1, %v2744_v4  ;;  %2592 = vmatpush3.bf16.msra.mxu0 %v2589_v63 }
 0x47d   : > { %v885_v9 = vsel %vm882_vm6, %v880_v8, %v2749_v6  ;;  %v886_v10 = vsel %vm882_vm6, %v881_v7, %v2750_v5 }
 0x47e   : > { %v2756_v11 = vpack.i.bf16 %v886_v10, %v885_v9  ;;  %v2593_v12 = vpack.c.bf16 %v886_v10, %v885_v9 }
 0x47f   : > { %2762 = vrot.lane.b32.xlu1 %v2751_v62, %s2971_s24 }
 0x480   : > { %2757 = vrot.lane.b32.xlu0 %v2756_v11, %s2974_s29  ;;  %2594 = vmatprep.subr.bf16.mxu0 %v2593_v12 }
 0x481   : > { %2596 = vmatpush3.bf16.msra.mxu0 %v2593_v12 }
 0x483   : > { %925 = vperm.xlu1 %2720, %v919_v13  }
 0x484   : > { %2767 = vrot.lane.b32.xlu0 %v2756_v11, %s2971_s24 }
 0x487   : > { %935 = vperm.xlu1 %2720, %v921_v15  }
 0x488   : > { %930 = vperm.xlu0 %2719, %v920_v16  }
 0x48c   : > { %940 = vperm.xlu0 %2719, %v922_v17  }
 0x4ed   : > { %v2753_v18 = vpop.permute.xlu1 %2752 }
 0x4ee   : > { %v2755_v19 = vunpack.i.h.bf16 %v2753_v18  ;;  %v2754_v20 = vunpack.i.l.bf16 %v2753_v18 }
 0x4f0   : > { %v2597_v21 = vpack.c.bf16 %v2755_v19, %v2754_v20 }
 0x4f1   : > { %v2763_v22 = vpop.permute.xlu1 %2762 }
 0x4f2   : > { %v2758_v23 = vpop.permute.xlu0 %2757  ;;  %2598 = vmatprep.subr.bf16.mxu0 %v2597_v21  ;;  %v2765_v24 = vunpack.i.h.bf16 %v2763_v22  ;;  %v2764_v25 = vunpack.i.l.bf16 %v2763_v22 }
 0x4f3   : > { %v2760_v26 = vunpack.i.h.bf16 %v2758_v23  ;;  %v2759_v27 = vunpack.i.l.bf16 %v2758_v23  ;;  %2600 = vmatpush3.bf16.msra.mxu0 %v2597_v21 }
 0x4f4   : > { %v2605_v30 = vpack.c.bf16 %v2765_v24, %v2764_v25 }
 0x4f5   : > { %v2601_v28 = vpack.c.bf16 %v2760_v26, %v2759_v27 }
 0x4f6   : > { %v2768_v29 = vpop.permute.xlu0 %2767 }
 0x4f7   : > { %v2770_v31 = vunpack.i.h.bf16 %v2768_v29  ;;  %v2769_v32 = vunpack.i.l.bf16 %v2768_v29  ;;  %2602 = vmatprep.subr.bf16.mxu0 %v2601_v28 }
 0x4f8   : > { %2604 = vmatpush3.bf16.msra.mxu0 %v2601_v28 }
 0x4f9   : > { %2606 = vmatprep.subr.bf16.mxu0 %v2605_v30  ;;  %v2609_v33 = vpack.c.bf16 %v2770_v31, %v2769_v32 }
 0x4fc   : > { %2608 = vmatpush3.bf16.msra.mxu0 %v2605_v30 }
 0x4fd   : > { %2610 = vmatprep.subr.bf16.mxu0 %v2609_v33 }
 0x500   : > { %2612 = vmatpush3.bf16.msra.mxu0 %v2609_v33 }
 0x502   : > { %v926_v46 = vpop.permute.xlu1 %925 }
 0x503   : > { %2451 = vmatmul.mubr.msk.f32.vlgmr.msra.gmra.mrb[4].mxu0 %vm943_vm7, %v916_v34 }
 0x504   : > { %2453 = vmatprep.mubr.msk.f32.mxu0 %vm943_vm7, %v917_v39 }
 0x506   : > { %v936_v55 = vpop.permute.xlu1 %935 }
 0x507   : > { %2454 = vmatmul.mubr.msk.f32.gmra.mrb[6].mxu0 %vm943_vm7, %v918_v40  ;;  %v931_v41 = vpop.permute.xlu0 %930 }
 0x50b   : > { %v941_v52 = vpop.permute.xlu0 %940 }
 0x5d6   : > { %v2452_v47 = vpop.f32.mrb[4].mxu0 }
 0x5d7   : > { %v1028_v48 = vadd.f32 %v2452_v47, %v931_v41  ;;  %v1022_v49 = vpop.f32.mrb[5].mxu0 }
 0x5d8   : > { %v1023_v50 = vadd.f32 %v1022_v49, %v926_v46 }
 0x5d9   : > { %v1044_v51 = vsel %vm551_vm3, %v1028_v48, 0.0 }
 0x5da   : > { %1045 = vadd.xlane.f32.xlu0 %v1044_v51  ;;  %v2455_v53 = vpop.f32.mrb[6].mxu0  ;;  %v1041_v54 = vsel %vm551_vm3, %v1023_v50, 0.0 }
 0x5db   : > { %v1038_v56 = vadd.f32 %v2455_v53, %v941_v52  ;;  %v1032_v57 = vpop.f32.mrb[7].mxu0  ;;  %1042 = vadd.xlane.f32.xlu1 %v1041_v54 }
 0x5dc   : > { %v1033_v58 = vadd.f32 %v1032_v57, %v936_v55 }
 0x5dd   : > { %v1050_v59 = vsel %vm551_vm3, %v1038_v56, 0.0 }
 0x5de   : > { %v1047_v60 = vsel %vm551_vm3, %v1033_v58, 0.0 }
 0x5df   : > { %1048 = vadd.xlane.f32.xlu0 %v1047_v60  ;;  %1051 = vadd.xlane.f32.xlu1 %v1050_v59 }
 0x667   : > { %v1046_v61 = vpop.xlane.xlu0 %1045 }
 0x668   : > { %v1054_v62 = vmul.f32 0.0625, %v1046_v61  ;;  %v1043_v63 = vpop.xlane.xlu1 %1042 }
 0x669   : > { %v1053_v0 = vmul.f32 0.0625, %v1043_v63 }
 0x66a   : > { %v1058_v1 = vsub.f32 %v1028_v48, %v1054_v62 }
 0x66b   : > { %v1057_v2 = vsub.f32 %v1023_v50, %v1053_v0 }
 0x66c   : > { %v1049_v3 = vpop.xlane.xlu0 %1048  ;;  %v1052_v4 = vpop.xlane.xlu1 %1051  ;;  %v1062_v5 = vmul.f32 %v1058_v1, %v1058_v1 }
 0x66d   : > { %v1055_v6 = vmul.f32 0.0625, %v1049_v3  ;;  %v1056_v7 = vmul.f32 0.0625, %v1052_v4  ;;  %v1061_v8 = vmul.f32 %v1057_v2, %v1057_v2 }
 0x66e   : > { %v1068_v9 = vsel %vm551_vm3, %v1062_v5, 0.0 }
 0x66f   : > { %v1059_v10 = vsub.f32 %v1033_v58, %v1055_v6  ;;  %v1060_v11 = vsub.f32 %v1038_v56, %v1056_v7  ;;  %1069 = vadd.xlane.f32.xlu1 %v1068_v9  ;;  %v1065_v12 = vsel %vm551_vm3, %v1061_v8, 0.0 }
 0x670   : > { %1066 = vadd.xlane.f32.xlu0 %v1065_v12 }
 0x671   : > { %v1063_v13 = vmul.f32 %v1059_v10, %v1059_v10  ;;  %v1064_v14 = vmul.f32 %v1060_v11, %v1060_v11 }
 0x673   : > { %v1071_v15 = vsel %vm551_vm3, %v1063_v13, 0.0  ;;  %v1074_v16 = vsel %vm551_vm3, %v1064_v14, 0.0 }
 0x674   : > { %1072 = vadd.xlane.f32.xlu0 %v1071_v15  ;;  %1075 = vadd.xlane.f32.xlu1 %v1074_v16 }
 0x6fc   : > { %v1070_v17 = vpop.xlane.xlu1 %1069 }
 0x6fd   : > { %v1078_v18 = vmul.f32 0.0625, %v1070_v17  ;;  %v1067_v19 = vpop.xlane.xlu0 %1066  ;;  %v1177_v17 = vld [vmem:[%s3474_s8] sm:$0xff] }
 0x6fe   : > { %v1077_v20 = vmul.f32 0.0625, %v1067_v19  ;;  %v1179_v19 = vld [vmem:[%s3474_s8 + $0x10] sm:$0xff] }
 0x6ff   : > { %v1082_v21 = vadd.f32 1e-05, %v1078_v18  ;;  %v1173_v18 = vld [vmem:[%s3473_s7] sm:$0xff] }
 0x700   : > { %v1081_v22 = vadd.f32 1e-05, %v1077_v20  ;;  %2480 = vmatprep.mubr.msk.f32.mxu1 %vm943_vm7, %v1173_v18  ;;  %v1178_v20 = vld [vmem:[%s3474_s8 + $0x8] sm:$0xff] }
 0x701   : > { %2929 = vrsqrt.f32 %v1082_v21  ;;  %v1073_v23 = vpop.xlane.xlu0 %1072  ;;  %v1076_v24 = vpop.xlane.xlu1 %1075  ;;  %v1180_v21 = vld [vmem:[%s3474_s8 + $0x18] sm:$0xff] }
 0x702   : > { %2931 = vrsqrt.f32 %v1081_v22  ;;  %v1079_v25 = vmul.f32 0.0625, %v1073_v23  ;;  %v1080_v26 = vmul.f32 0.0625, %v1076_v24 }
 0x704   : > { %v1083_v27 = vadd.f32 1e-05, %v1079_v25  ;;  %v1084_v28 = vadd.f32 1e-05, %v1080_v26 }
 0x706   : > { %2933 = vrsqrt.f32 %v1083_v27 }
 0x707   : > { %2935 = vrsqrt.f32 %v1084_v28 }
 0x70b   : > { %v2930_v29 = vpop.eup %2929 }
 0x70c   : > { %v2932_v30 = vpop.eup %2931  ;;  %v1090_v31 = vmul.f32 %v2930_v29, %v1058_v1 }
 0x70d   : > { %v1089_v32 = vmul.f32 %v2932_v30, %v1057_v2 }
 0x70e   : > { %v1094_v33 = vmax.f32 %v1090_v31, 0.0 }
 0x70f   : > { %v1093_v34 = vmax.f32 %v1089_v32, 0.0 }
 0x710   : > { %v2934_v39 = vpop.eup %2933 }
 0x711   : > { %v2936_v40 = vpop.eup %2935  ;;  %v2776_v41 = vpack.i.bf16 %v1094_v33, %v1093_v34  ;;  %v1091_v46 = vmul.f32 %v2934_v39, %v1059_v10 }
 0x712   : > { %v1092_v47 = vmul.f32 %v2936_v40, %v1060_v11 }
 0x713   : > { %2777 = vrot.lane.b32.xlu1 %v2776_v41, %s2977_s27  ;;  %2772 = vrot.lane.b32.xlu0 %v2776_v41, %s2974_s29  ;;  %v1095_v48 = vmax.f32 %v1091_v46, 0.0  ;;  %v1174_v46 = vld [vmem:[%s3473_s7 + $0x8] sm:$0xff] }
 0x714   : > { %v1096_v49 = vmax.f32 %v1092_v47, 0.0  ;;  %v1175_v47 = vld [vmem:[%s3473_s7 + $0x10] sm:$0xff] }
 0x716   : > { %v2786_v50 = vpack.i.bf16 %v1096_v49, %v1095_v48  ;;  %v1176_v48 = vld [vmem:[%s3473_s7 + $0x18] sm:$0xff] }
 0x717   : > { %2782 = vrot.lane.b32.xlu1 %v2776_v41, %s2978_s28 }
 0x718   : > { %2787 = vrot.lane.b32.xlu0 %v2786_v50, %s2974_s29 }
 0x71b   : > { %2792 = vrot.lane.b32.xlu1 %v2786_v50, %s2977_s27 }
 0x71c   : > { %2797 = vrot.lane.b32.xlu0 %v2786_v50, %s2978_s28 }
 0x785   : > { %v2773_v51 = vpop.permute.xlu0 %2772  ;;  %v2778_v52 = vpop.permute.xlu1 %2777 }
 0x786   : > { %v2775_v53 = vunpack.i.h.bf16 %v2773_v51  ;;  %v2774_v54 = vunpack.i.l.bf16 %v2773_v51  ;;  %v2780_v55 = vunpack.i.h.bf16 %v2778_v52  ;;  %v2779_v56 = vunpack.i.l.bf16 %v2778_v52 }
 0x788   : > { %v1138_v61 = vsel %vm503_vm0, %v2775_v53, %v2780_v55  ;;  %v1137_v62 = vsel %vm503_vm0, %v2774_v54, %v2779_v56 }
 0x789   : > { %v2783_v57 = vpop.permute.xlu1 %2782 }
 0x78a   : > { %v2788_v58 = vpop.permute.xlu0 %2787  ;;  %v2785_v59 = vunpack.i.h.bf16 %v2783_v57  ;;  %v2784_v60 = vunpack.i.l.bf16 %v2783_v57 }
 0x78b   : > { %v2790_v4 = vunpack.i.h.bf16 %v2788_v58  ;;  %v2789_v5 = vunpack.i.l.bf16 %v2788_v58 }
 0x78c   : > { %v1141_v63 = vsel %vm882_vm6, %v1137_v62, %v2784_v60  ;;  %v1142_v0 = vsel %vm882_vm6, %v1138_v61, %v2785_v59 }
 0x78d   : > { %v2793_v1 = vpop.permute.xlu1 %2792  ;;  %v2801_v2 = vpack.i.bf16 %v1142_v0, %v1141_v63  ;;  %v2613_v3 = vpack.c.bf16 %v1142_v0, %v1141_v63 }
 0x78e   : > { %v2798_v6 = vpop.permute.xlu0 %2797  ;;  %v2795_v7 = vunpack.i.h.bf16 %v2793_v1  ;;  %v2794_v8 = vunpack.i.l.bf16 %v2793_v1 }
 0x78f   : > { %v2800_v9 = vunpack.i.h.bf16 %v2798_v6  ;;  %v2799_v10 = vunpack.i.l.bf16 %v2798_v6  ;;  %2802 = vrot.lane.b32.xlu1 %v2801_v2, %s2974_s29  ;;  %2614 = vmatprep.subr.bf16.mxu1 %v2613_v3 }
 0x790   : > { %v1140_v11 = vsel %vm503_vm0, %v2790_v4, %v2795_v7  ;;  %v1139_v12 = vsel %vm503_vm0, %v2789_v5, %v2794_v8  ;;  %2616 = vmatpush3.bf16.msra.mxu1 %v2613_v3 }
 0x791   : > { %v1143_v13 = vsel %vm882_vm6, %v1139_v12, %v2799_v10  ;;  %v1144_v14 = vsel %vm882_vm6, %v1140_v11, %v2800_v9 }
 0x792   : > { %v2806_v15 = vpack.i.bf16 %v1144_v14, %v1143_v13  ;;  %v2617_v16 = vpack.c.bf16 %v1144_v14, %v1143_v13 }
 0x793   : > { %2812 = vrot.lane.b32.xlu1 %v2801_v2, %s2971_s24 }
 0x794   : > { %2807 = vrot.lane.b32.xlu0 %v2806_v15, %s2974_s29  ;;  %2618 = vmatprep.subr.bf16.mxu1 %v2617_v16 }
 0x795   : > { %2620 = vmatpush3.bf16.msra.mxu1 %v2617_v16 }
 0x797   : > { %1183 = vperm.xlu1 %2720, %v1177_v17  }
 0x798   : > { %2817 = vrot.lane.b32.xlu0 %v2806_v15, %s2971_s24 }
 0x79b   : > { %1193 = vperm.xlu1 %2720, %v1179_v19  }
 0x79c   : > { %1188 = vperm.xlu0 %2719, %v1178_v20  }
 0x7a0   : > { %1198 = vperm.xlu0 %2719, %v1180_v21  }
 0x801   : > { %v2803_v22 = vpop.permute.xlu1 %2802 }
 0x802   : > { %v2805_v23 = vunpack.i.h.bf16 %v2803_v22  ;;  %v2804_v24 = vunpack.i.l.bf16 %v2803_v22 }
 0x804   : > { %v2621_v25 = vpack.c.bf16 %v2805_v23, %v2804_v24 }
 0x805   : > { %v2813_v26 = vpop.permute.xlu1 %2812 }
 0x806   : > { %v2808_v27 = vpop.permute.xlu0 %2807  ;;  %2622 = vmatprep.subr.bf16.mxu1 %v2621_v25  ;;  %v2815_v28 = vunpack.i.h.bf16 %v2813_v26  ;;  %v2814_v29 = vunpack.i.l.bf16 %v2813_v26 }
 0x807   : > { %v2810_v30 = vunpack.i.h.bf16 %v2808_v27  ;;  %v2809_v31 = vunpack.i.l.bf16 %v2808_v27  ;;  %2624 = vmatpush3.bf16.msra.mxu1 %v2621_v25 }
 0x808   : > { %v2629_v34 = vpack.c.bf16 %v2815_v28, %v2814_v29 }
 0x809   : > { %v2625_v32 = vpack.c.bf16 %v2810_v30, %v2809_v31 }
 0x80a   : > { %v2818_v33 = vpop.permute.xlu0 %2817 }
 0x80b   : > { %v2820_v39 = vunpack.i.h.bf16 %v2818_v33  ;;  %v2819_v40 = vunpack.i.l.bf16 %v2818_v33  ;;  %2626 = vmatprep.subr.bf16.mxu1 %v2625_v32 }
 0x80c   : > { %2628 = vmatpush3.bf16.msra.mxu1 %v2625_v32 }
 0x80d   : > { %2630 = vmatprep.subr.bf16.mxu1 %v2629_v34  ;;  %v2633_v41 = vpack.c.bf16 %v2820_v39, %v2819_v40 }
 0x810   : > { %2632 = vmatpush3.bf16.msra.mxu1 %v2629_v34 }
 0x811   : > { %2634 = vmatprep.subr.bf16.mxu1 %v2633_v41 }
 0x814   : > { %2636 = vmatpush3.bf16.msra.mxu1 %v2633_v41 }
 0x816   : > { %v1184_v50 = vpop.permute.xlu1 %1183 }
 0x817   : > { %2481 = vmatmul.mubr.msk.f32.vlgmr.msra.gmra.mrb[4].mxu1 %vm943_vm7, %v1174_v46 }
 0x818   : > { %2483 = vmatprep.mubr.msk.f32.mxu1 %vm943_vm7, %v1175_v47 }
 0x81a   : > { %v1194_v59 = vpop.permute.xlu1 %1193 }
 0x81b   : > { %2484 = vmatmul.mubr.msk.f32.gmra.mrb[6].mxu1 %vm943_vm7, %v1176_v48  ;;  %v1189_v49 = vpop.permute.xlu0 %1188 }
 0x81f   : > { %v1199_v56 = vpop.permute.xlu0 %1198 }
 0x8ea   : > { %v2482_v51 = vpop.f32.mrb[4].mxu1 }
 0x8eb   : > { %v1285_v52 = vadd.f32 %v2482_v51, %v1189_v49  ;;  %v1279_v53 = vpop.f32.mrb[5].mxu1 }
 0x8ec   : > { %v1280_v54 = vadd.f32 %v1279_v53, %v1184_v50 }
 0x8ed   : > { %v1301_v55 = vsel %vm551_vm3, %v1285_v52, 0.0 }
 0x8ee   : > { %1302 = vadd.xlane.f32.xlu0 %v1301_v55  ;;  %v2485_v57 = vpop.f32.mrb[6].mxu1  ;;  %v1298_v58 = vsel %vm551_vm3, %v1280_v54, 0.0 }
 0x8ef   : > { %v1295_v60 = vadd.f32 %v2485_v57, %v1199_v56  ;;  %v1289_v61 = vpop.f32.mrb[7].mxu1  ;;  %1299 = vadd.xlane.f32.xlu1 %v1298_v58 }
 0x8f0   : > { %v1290_v62 = vadd.f32 %v1289_v61, %v1194_v59 }
 0x8f1   : > { %v1307_v63 = vsel %vm551_vm3, %v1295_v60, 0.0 }
 0x8f2   : > { %v1304_v0 = vsel %vm551_vm3, %v1290_v62, 0.0 }
 0x8f3   : > { %1305 = vadd.xlane.f32.xlu0 %v1304_v0  ;;  %1308 = vadd.xlane.f32.xlu1 %v1307_v63 }
 0x97b   : > { %v1303_v1 = vpop.xlane.xlu0 %1302 }
 0x97c   : > { %v1311_v2 = vmul.f32 0.0625, %v1303_v1  ;;  %v1300_v3 = vpop.xlane.xlu1 %1299 }
 0x97d   : > { %v1310_v4 = vmul.f32 0.0625, %v1300_v3 }
 0x97e   : > { %v1315_v5 = vsub.f32 %v1285_v52, %v1311_v2 }
 0x97f   : > { %v1314_v6 = vsub.f32 %v1280_v54, %v1310_v4 }
 0x980   : > { %v1306_v7 = vpop.xlane.xlu0 %1305  ;;  %v1309_v8 = vpop.xlane.xlu1 %1308  ;;  %v1319_v9 = vmul.f32 %v1315_v5, %v1315_v5 }
 0x981   : > { %v1312_v10 = vmul.f32 0.0625, %v1306_v7  ;;  %v1313_v11 = vmul.f32 0.0625, %v1309_v8  ;;  %v1318_v12 = vmul.f32 %v1314_v6, %v1314_v6 }
 0x982   : > { %v1325_v13 = vsel %vm551_vm3, %v1319_v9, 0.0 }
 0x983   : > { %v1316_v14 = vsub.f32 %v1290_v62, %v1312_v10  ;;  %v1317_v15 = vsub.f32 %v1295_v60, %v1313_v11  ;;  %1326 = vadd.xlane.f32.xlu1 %v1325_v13  ;;  %v1322_v16 = vsel %vm551_vm3, %v1318_v12, 0.0 }
 0x984   : > { %1323 = vadd.xlane.f32.xlu0 %v1322_v16 }
 0x985   : > { %v1320_v17 = vmul.f32 %v1316_v14, %v1316_v14  ;;  %v1321_v18 = vmul.f32 %v1317_v15, %v1317_v15 }
 0x987   : > { %v1328_v19 = vsel %vm551_vm3, %v1320_v17, 0.0  ;;  %v1331_v20 = vsel %vm551_vm3, %v1321_v18, 0.0  ;;  %v1438_v17 = vld [vmem:[%s3476_s10] sm:$0xff] }
 0x988   : > { %1329 = vadd.xlane.f32.xlu0 %v1328_v19  ;;  %1332 = vadd.xlane.f32.xlu1 %v1331_v20  ;;  %v1434_v18 = vld [vmem:[%s3475_s9] sm:$0xff]  ;;  %v1440_v19 = vld [vmem:[%s3476_s10 + $0x10] sm:$0xff]  ;;  %v1439_v20 = vld [vmem:[%s3476_s10 + $0x8] sm:$0xff] }
 0x989   : > { %2510 = vmatprep.mubr.msk.f32.mxu0 %vm943_vm7, %v1434_v18 }
 0xa10   : > { %v1327_v21 = vpop.xlane.xlu1 %1326 }
 0xa11   : > { %v1335_v22 = vmul.f32 0.0625, %v1327_v21  ;;  %v1324_v23 = vpop.xlane.xlu0 %1323  ;;  %v1441_v21 = vld [vmem:[%s3476_s10 + $0x18] sm:$0xff] }
 0xa12   : > { %v1334_v24 = vmul.f32 0.0625, %v1324_v23 }
 0xa13   : > { %v1339_v25 = vadd.f32 1e-05, %v1335_v22 }
 0xa14   : > { %v1338_v26 = vadd.f32 1e-05, %v1334_v24 }
 0xa15   : > { %2937 = vrsqrt.f32 %v1339_v25  ;;  %v1330_v27 = vpop.xlane.xlu0 %1329  ;;  %v1333_v28 = vpop.xlane.xlu1 %1332 }
 0xa16   : > { %2939 = vrsqrt.f32 %v1338_v26  ;;  %v1336_v29 = vmul.f32 0.0625, %v1330_v27  ;;  %v1337_v30 = vmul.f32 0.0625, %v1333_v28 }
 0xa18   : > { %v1340_v31 = vadd.f32 1e-05, %v1336_v29  ;;  %v1341_v32 = vadd.f32 1e-05, %v1337_v30 }
 0xa1a   : > { %2941 = vrsqrt.f32 %v1340_v31 }
 0xa1b   : > { %2943 = vrsqrt.f32 %v1341_v32 }
 0xa1f   : > { %v2938_v33 = vpop.eup %2937 }
 0xa20   : > { %v2940_v34 = vpop.eup %2939  ;;  %v1347_v39 = vmul.f32 %v2938_v33, %v1315_v5 }
 0xa21   : > { %v1346_v40 = vmul.f32 %v2940_v34, %v1314_v6 }
 0xa22   : > { %v1351_v41 = vmax.f32 %v1347_v39, 0.0 }
 0xa23   : > { %v1350_v46 = vmax.f32 %v1346_v40, 0.0 }
 0xa24   : > { %v2942_v47 = vpop.eup %2941  ;;  %v3285_v48 = vadd.f32 %v1351_v41, %v835_v37 }
 0xa25   : > { %v2944_v49 = vpop.eup %2943  ;;  %v1348_v50 = vmul.f32 %v2942_v47, %v1316_v14  ;;  %v3289_v51 = vadd.f32 %v1350_v46, %v834_v38  ;;  %v1435_v46 = vld [vmem:[%s3475_s9 + $0x8] sm:$0xff]  ;;  %v1436_v47 = vld [vmem:[%s3475_s9 + $0x10] sm:$0xff] }
 0xa26   : > { %v1349_v52 = vmul.f32 %v2944_v49, %v1317_v15  ;;  %v1437_v49 = vld [vmem:[%s3475_s9 + $0x18] sm:$0xff] }
 0xa27   : > { %v1352_v53 = vmax.f32 %v1348_v50, 0.0  ;;  %v2826_v54 = vpack.i.bf16 %v3285_v48, %v3289_v51 }
 0xa28   : > { %v1353_v55 = vmax.f32 %v1349_v52, 0.0 }
 0xa29   : > { %2827 = vrot.lane.b32.xlu1 %v2826_v54, %s2977_s27  ;;  %2822 = vrot.lane.b32.xlu0 %v2826_v54, %s2974_s29  ;;  %v3297_v35 = vadd.f32 %v1352_v53, %v836_v44 }
 0xa2a   : > { %v3301_v37 = vadd.f32 %v1353_v55, %v837_v45 }
 0xa2c   : > { %v2836_v36 = vpack.i.bf16 %v3301_v37, %v3297_v35 }
 0xa2d   : > { %2832 = vrot.lane.b32.xlu1 %v2826_v54, %s2978_s28 }
 0xa2e   : > { %2837 = vrot.lane.b32.xlu0 %v2836_v36, %s2974_s29 }
 0xa31   : > { %2842 = vrot.lane.b32.xlu1 %v2836_v36, %s2977_s27 }
 0xa32   : > { %2847 = vrot.lane.b32.xlu0 %v2836_v36, %s2978_s28 }
 0xa9b   : > { %v2823_v38 = vpop.permute.xlu0 %2822  ;;  %v2828_v56 = vpop.permute.xlu1 %2827 }
 0xa9c   : > { %v2825_v42 = vunpack.i.h.bf16 %v2823_v38  ;;  %v2824_v44 = vunpack.i.l.bf16 %v2823_v38  ;;  %v2830_v57 = vunpack.i.h.bf16 %v2828_v56  ;;  %v2829_v58 = vunpack.i.l.bf16 %v2828_v56 }
 0xa9e   : > { %v1399_v61 = vsel %vm503_vm0, %v2825_v42, %v2830_v57  ;;  %v1398_v62 = vsel %vm503_vm0, %v2824_v44, %v2829_v58 }
 0xa9f   : > { %v2833_v43 = vpop.permute.xlu1 %2832 }
 0xaa0   : > { %v2838_v45 = vpop.permute.xlu0 %2837  ;;  %v2835_v59 = vunpack.i.h.bf16 %v2833_v43  ;;  %v2834_v60 = vunpack.i.l.bf16 %v2833_v43 }
 0xaa1   : > { %v2840_v4 = vunpack.i.h.bf16 %v2838_v45  ;;  %v2839_v5 = vunpack.i.l.bf16 %v2838_v45 }
 0xaa2   : > { %v1402_v63 = vsel %vm882_vm6, %v1398_v62, %v2834_v60  ;;  %v1403_v0 = vsel %vm882_vm6, %v1399_v61, %v2835_v59 }
 0xaa3   : > { %v2843_v1 = vpop.permute.xlu1 %2842  ;;  %v2851_v2 = vpack.i.bf16 %v1403_v0, %v1402_v63  ;;  %v2637_v3 = vpack.c.bf16 %v1403_v0, %v1402_v63 }
 0xaa4   : > { %v2848_v6 = vpop.permute.xlu0 %2847  ;;  %v2845_v7 = vunpack.i.h.bf16 %v2843_v1  ;;  %v2844_v8 = vunpack.i.l.bf16 %v2843_v1 }
 0xaa5   : > { %v2850_v9 = vunpack.i.h.bf16 %v2848_v6  ;;  %v2849_v10 = vunpack.i.l.bf16 %v2848_v6  ;;  %2852 = vrot.lane.b32.xlu1 %v2851_v2, %s2974_s29  ;;  %2638 = vmatprep.subr.bf16.mxu0 %v2637_v3 }
 0xaa6   : > { %v1401_v11 = vsel %vm503_vm0, %v2840_v4, %v2845_v7  ;;  %v1400_v12 = vsel %vm503_vm0, %v2839_v5, %v2844_v8  ;;  %2640 = vmatpush3.bf16.msra.mxu0 %v2637_v3 }
 0xaa7   : > { %v1404_v13 = vsel %vm882_vm6, %v1400_v12, %v2849_v10  ;;  %v1405_v14 = vsel %vm882_vm6, %v1401_v11, %v2850_v9 }
 0xaa8   : > { %v2856_v15 = vpack.i.bf16 %v1405_v14, %v1404_v13  ;;  %v2641_v16 = vpack.c.bf16 %v1405_v14, %v1404_v13 }
 0xaa9   : > { %2862 = vrot.lane.b32.xlu1 %v2851_v2, %s2971_s24 }
 0xaaa   : > { %2857 = vrot.lane.b32.xlu0 %v2856_v15, %s2974_s29  ;;  %2642 = vmatprep.subr.bf16.mxu0 %v2641_v16 }
 0xaab   : > { %2644 = vmatpush3.bf16.msra.mxu0 %v2641_v16 }
 0xaad   : > { %1444 = vperm.xlu1 %2720, %v1438_v17  }
 0xaae   : > { %2867 = vrot.lane.b32.xlu0 %v2856_v15, %s2971_s24 }
 0xab1   : > { %1454 = vperm.xlu1 %2720, %v1440_v19  }
 0xab2   : > { %1449 = vperm.xlu0 %2719, %v1439_v20  }
 0xab6   : > { %1459 = vperm.xlu0 %2719, %v1441_v21  }
 0xb17   : > { %v2853_v22 = vpop.permute.xlu1 %2852 }
 0xb18   : > { %v2855_v23 = vunpack.i.h.bf16 %v2853_v22  ;;  %v2854_v24 = vunpack.i.l.bf16 %v2853_v22 }
 0xb1a   : > { %v2645_v25 = vpack.c.bf16 %v2855_v23, %v2854_v24 }
 0xb1b   : > { %v2863_v26 = vpop.permute.xlu1 %2862 }
 0xb1c   : > { %v2858_v27 = vpop.permute.xlu0 %2857  ;;  %2646 = vmatprep.subr.bf16.mxu0 %v2645_v25  ;;  %v2865_v28 = vunpack.i.h.bf16 %v2863_v26  ;;  %v2864_v29 = vunpack.i.l.bf16 %v2863_v26 }
 0xb1d   : > { %v2860_v30 = vunpack.i.h.bf16 %v2858_v27  ;;  %v2859_v31 = vunpack.i.l.bf16 %v2858_v27  ;;  %2648 = vmatpush3.bf16.msra.mxu0 %v2645_v25 }
 0xb1e   : > { %v2653_v34 = vpack.c.bf16 %v2865_v28, %v2864_v29 }
 0xb1f   : > { %v2649_v32 = vpack.c.bf16 %v2860_v30, %v2859_v31 }
 0xb20   : > { %v2868_v33 = vpop.permute.xlu0 %2867 }
 0xb21   : > { %v2870_v39 = vunpack.i.h.bf16 %v2868_v33  ;;  %v2869_v40 = vunpack.i.l.bf16 %v2868_v33  ;;  %2650 = vmatprep.subr.bf16.mxu0 %v2649_v32 }
 0xb22   : > { %2652 = vmatpush3.bf16.msra.mxu0 %v2649_v32 }
 0xb23   : > { %2654 = vmatprep.subr.bf16.mxu0 %v2653_v34  ;;  %v2657_v41 = vpack.c.bf16 %v2870_v39, %v2869_v40 }
 0xb26   : > { %2656 = vmatpush3.bf16.msra.mxu0 %v2653_v34 }
 0xb27   : > { %2658 = vmatprep.subr.bf16.mxu0 %v2657_v41 }
 0xb2a   : > { %2660 = vmatpush3.bf16.msra.mxu0 %v2657_v41 }
 0xb2c   : > { %v1445_v52 = vpop.permute.xlu1 %1444 }
 0xb2d   : > { %2511 = vmatmul.mubr.msk.f32.vlgmr.msra.gmra.mrb[8].mxu0 %vm943_vm7, %v1435_v46 }
 0xb2e   : > { %2513 = vmatprep.mubr.msk.f32.mxu0 %vm943_vm7, %v1436_v47 }
 0xb30   : > { %v1455_v57 = vpop.permute.xlu1 %1454 }
 0xb31   : > { %2514 = vmatmul.mubr.msk.f32.gmra.mrb[10].mxu0 %vm943_vm7, %v1437_v49  ;;  %v1450_v50 = vpop.permute.xlu0 %1449 }
 0xb35   : > { %v1460_v56 = vpop.permute.xlu0 %1459 }
 0xc00   : > { %v2512_v53 = vpop.f32.mrb[8].mxu0 }
 0xc01   : > { %v1546_v54 = vadd.f32 %v2512_v53, %v1450_v50  ;;  %v1540_v55 = vpop.f32.mrb[9].mxu0  ;;  %v1816_v53 = vlaneseq }
 0xc02   : > { %v1541_v36 = vadd.f32 %v1540_v55, %v1445_v52 }
 0xc03   : > { %v1562_v38 = vsel %vm551_vm3, %v1546_v54, 0.0 }
 0xc04   : > { %1563 = vadd.xlane.f32.xlu0 %v1562_v38  ;;  %v2515_v42 = vpop.f32.mrb[10].mxu0  ;;  %v1559_v44 = vsel %vm551_vm3, %v1541_v36, 0.0 }
 0xc05   : > { %v1556_v58 = vadd.f32 %v2515_v42, %v1460_v56  ;;  %v1550_v43 = vpop.f32.mrb[11].mxu0  ;;  %1560 = vadd.xlane.f32.xlu1 %v1559_v44 }
 0xc06   : > { %v1551_v45 = vadd.f32 %v1550_v43, %v1455_v57 }
 0xc07   : > { %v1568_v59 = vsel %vm551_vm3, %v1556_v58, 0.0 }
 0xc08   : > { %v1565_v60 = vsel %vm551_vm3, %v1551_v45, 0.0 }
 0xc09   : > { %1566 = vadd.xlane.f32.xlu0 %v1565_v60  ;;  %1569 = vadd.xlane.f32.xlu1 %v1568_v59 }
 0xc91   : > { %v1564_v61 = vpop.xlane.xlu0 %1563 }
 0xc92   : > { %v1572_v62 = vmul.f32 0.0625, %v1564_v61  ;;  %v1561_v63 = vpop.xlane.xlu1 %1560 }
 0xc93   : > { %v1571_v0 = vmul.f32 0.0625, %v1561_v63 }
 0xc94   : > { %v1576_v1 = vsub.f32 %v1546_v54, %v1572_v62  ;;  %v1820_v54 = vand.u32 127, %v1816_v53 }
 0xc95   : > { %v1575_v2 = vsub.f32 %v1541_v36, %v1571_v0 }
 0xc96   : > { %v1567_v3 = vpop.xlane.xlu0 %1566  ;;  %v1570_v4 = vpop.xlane.xlu1 %1569  ;;  %v1580_v5 = vmul.f32 %v1576_v1, %v1576_v1  ;;  %v3363_v38 = vmul.u32 2, %v1820_v54 }
 0xc97   : > { %v1573_v6 = vmul.f32 0.0625, %v1567_v3  ;;  %v1574_v7 = vmul.f32 0.0625, %v1570_v4  ;;  %v1579_v8 = vmul.f32 %v1575_v2, %v1575_v2 }
 0xc98   : > { %v1586_v9 = vsel %vm551_vm3, %v1580_v5, 0.0 }
 0xc99   : > { %v1577_v10 = vsub.f32 %v1551_v45, %v1573_v6  ;;  %v1578_v11 = vsub.f32 %v1556_v58, %v1574_v7  ;;  %1587 = vadd.xlane.f32.xlu1 %v1586_v9  ;;  %v1583_v12 = vsel %vm551_vm3, %v1579_v8, 0.0  ;;  %v1839_v58 = vsub.s32 16, %v3363_v38 }
 0xc9a   : > { %1584 = vadd.xlane.f32.xlu0 %v1583_v12 }
 0xc9b   : > { %v1581_v13 = vmul.f32 %v1577_v10, %v1577_v10  ;;  %v1582_v14 = vmul.f32 %v1578_v11, %v1578_v11  ;;  %vm1840_vm8 = vcmp.lt.s32.totalorder %v1839_v58, 2 }
 0xc9c   : > { %v1841_v61 = vsel %vm1840_vm8, %v1839_v58, 2  ;;  %v1693_v58 = vld [vmem:[%s3477_s11 + $0x10] sm:$0xff] }
 0xc9d   : > { %v1589_v15 = vsel %vm551_vm3, %v1581_v13, 0.0  ;;  %v1592_v16 = vsel %vm551_vm3, %v1582_v14, 0.0  ;;  %v1842_v0 = vcvt.s32.f32 %v1841_v61 }
 0xc9e   : > { %1590 = vadd.xlane.f32.xlu0 %v1589_v15  ;;  %1593 = vadd.xlane.f32.xlu1 %v1592_v16 }
 0xd26   : > { %v1588_v17 = vpop.xlane.xlu1 %1587 }
 0xd27   : > { %v1596_v18 = vmul.f32 0.0625, %v1588_v17  ;;  %v1585_v19 = vpop.xlane.xlu0 %1584  ;;  %v1817_v17 = vshrl.u32 %v1816_v53, 7 }
 0xd28   : > { %v1595_v20 = vmul.f32 0.0625, %v1585_v19 }
 0xd29   : > { %v1600_v21 = vadd.f32 1e-05, %v1596_v18  ;;  %vm1828_vm9 = vcmp.ge.s32.totalorder %v1817_v17, %v3363_v38  ;;  %vm1822_vm15 = vcmp.eq.s32.totalorder %v1817_v17, %v3363_v38 }
 0xd2a   : > { %v1599_v22 = vadd.f32 1e-05, %v1595_v20  ;;  %v1818_v20 = vadd.s32 8, %v1817_v17 }
 0xd2b   : > { %2945 = vrsqrt.f32 %v1600_v21  ;;  %v1591_v23 = vpop.xlane.xlu0 %1590  ;;  %v1594_v24 = vpop.xlane.xlu1 %1593  ;;  %v1830_v21 = vadd.s32 2, %v3363_v38 }
 0xd2c   : > { %2947 = vrsqrt.f32 %v1599_v22  ;;  %v1597_v25 = vmul.f32 0.0625, %v1591_v23  ;;  %v1598_v26 = vmul.f32 0.0625, %v1594_v24  ;;  %v1695_v22 = vld [vmem:[%s3478_s12] sm:$0xff]  ;;  %vm1829_vm10 = vcmp.ge.s32.totalorder %v1818_v20, %v3363_v38 }
 0xd2d   : > { %v1691_v23 = vld [vmem:[%s3477_s11] sm:$0xff]  ;;  %vm1831_vm11 = vcmp.lt.s32.totalorder %v1817_v17, %v1830_v21  ;;  %vm1832_vm12 = vcmp.lt.s32.totalorder %v1818_v20, %v1830_v21 }
 0xd2e   : > { %v1601_v27 = vadd.f32 1e-05, %v1597_v25  ;;  %v1602_v28 = vadd.f32 1e-05, %v1598_v26  ;;  %2540 = vmatprep.mubr.msk.f32.mxu1 %vm943_vm7, %v1691_v23  ;;  %vm1833_vm13 = vmand %vm1828_vm9, %vm1831_vm11  ;;  %v2979_v25 = vmov 0.0  }
 0xd2f   : > { %vm1834_vm14 = vmand %vm1829_vm10, %vm1832_vm12  ;;  %v2286_v26 = vsel %vm1833_vm13, 1.0, %v2979_v25 }
 0xd30   : > { %2949 = vrsqrt.f32 %v1601_v27  ;;  %v1697_v27 = vld [vmem:[%s3478_s12 + $0x10] sm:$0xff] }
 0xd31   : > { %2951 = vrsqrt.f32 %v1602_v28  ;;  %v2287_v28 = vsel %vm1834_vm14, 1.0, %v2979_v25 }
 0xd32   : > { %2953 = vrcp.f32 %v1842_v0 }
 0xd35   : > { %v2946_v29 = vpop.eup %2945 }
 0xd36   : > { %v2948_v30 = vpop.eup %2947  ;;  %v1608_v31 = vmul.f32 %v2946_v29, %v1576_v1 }
 0xd37   : > { %v1607_v32 = vmul.f32 %v2948_v30, %v1575_v2  ;;  %v1696_v30 = vld [vmem:[%s3478_s12 + $0x8] sm:$0xff] }
 0xd38   : > { %v1612_v33 = vmax.f32 %v1608_v31, 0.0 }
 0xd39   : > { %v1611_v34 = vmax.f32 %v1607_v32, 0.0 }
 0xd3a   : > { %v2950_v39 = vpop.eup %2949 }
 0xd3b   : > { %v2952_v40 = vpop.eup %2951  ;;  %v2876_v41 = vpack.i.bf16 %v1612_v33, %v1611_v34  ;;  %v1609_v46 = vmul.f32 %v2950_v39, %v1577_v10  ;;  %v1698_v33 = vld [vmem:[%s3478_s12 + $0x18] sm:$0xff]  ;;  %v2980_v34 = vmov 1.0|1.0  }
 0xd3c   : > { %v1610_v47 = vmul.f32 %v2952_v40, %v1578_v11  ;;  %v2954_v24 = vpop.eup %2953 }
 0xd3d   : > { %2877 = vrot.lane.b32.xlu1 %v2876_v41, %s2977_s27  ;;  %2872 = vrot.lane.b32.xlu0 %v2876_v41, %s2974_s29  ;;  %v1613_v49 = vmax.f32 %v1609_v46, 0.0  ;;  %v1941_v29 = vmul.f32 %v2954_v24, %v2286_v26  ;;  %v1942_v31 = vmul.f32 %v2954_v24, %v2287_v28 }
 0xd3e   : > { %v1614_v50 = vmax.f32 %v1610_v47, 0.0 }
 0xd3f   : > { %v2689_v32 = vpack.c.bf16 %v1942_v31, %v1941_v29 }
 0xd40   : > { %v2886_v52 = vpack.i.bf16 %v1614_v50, %v1613_v49 }
 0xd41   : > { %2882 = vrot.lane.b32.xlu1 %v2876_v41, %s2978_s28 }
 0xd42   : > { %2887 = vrot.lane.b32.xlu0 %v2886_v52, %s2974_s29 }
 0xd45   : > { %2892 = vrot.lane.b32.xlu1 %v2886_v52, %s2977_s27 }
 0xd46   : > { %2897 = vrot.lane.b32.xlu0 %v2886_v52, %s2978_s28  ;;  %s491_s28 = scalar_lea.vmem %s3481_s15, %s2302_s16 }
 0xdaf   : > { %v2873_v55 = vpop.permute.xlu0 %2872  ;;  %v2878_v36 = vpop.permute.xlu1 %2877 }
 0xdb0   : > { %v2875_v56 = vunpack.i.h.bf16 %v2873_v55  ;;  %v2874_v42 = vunpack.i.l.bf16 %v2873_v55  ;;  %v2880_v44 = vunpack.i.h.bf16 %v2878_v36  ;;  %v2879_v57 = vunpack.i.l.bf16 %v2878_v36 }
 0xdb2   : > { %v1656_v62 = vsel %vm503_vm0, %v2875_v56, %v2880_v44  ;;  %v1655_v63 = vsel %vm503_vm0, %v2874_v42, %v2879_v57  ;;  %v1692_v57 = vld [vmem:[%s3477_s11 + $0x8] sm:$0xff] }
 0xdb3   : > { %v2883_v43 = vpop.permute.xlu1 %2882 }
 0xdb4   : > { %v2888_v45 = vpop.permute.xlu0 %2887  ;;  %v2885_v59 = vunpack.i.h.bf16 %v2883_v43  ;;  %v2884_v60 = vunpack.i.l.bf16 %v2883_v43  ;;  %v1694_v43 = vld [vmem:[%s3477_s11 + $0x18] sm:$0xff] }
 0xdb5   : > { %v2890_v6 = vunpack.i.h.bf16 %v2888_v45  ;;  %v2889_v7 = vunpack.i.l.bf16 %v2888_v45 }
 0xdb6   : > { %v1659_v1 = vsel %vm882_vm6, %v1655_v63, %v2884_v60  ;;  %v1660_v2 = vsel %vm882_vm6, %v1656_v62, %v2885_v59 }
 0xdb7   : > { %v2893_v3 = vpop.permute.xlu1 %2892  ;;  %v2901_v4 = vpack.i.bf16 %v1660_v2, %v1659_v1  ;;  %v2661_v5 = vpack.c.bf16 %v1660_v2, %v1659_v1 }
 0xdb8   : > { %v2898_v8 = vpop.permute.xlu0 %2897  ;;  %v2895_v9 = vunpack.i.h.bf16 %v2893_v3  ;;  %v2894_v10 = vunpack.i.l.bf16 %v2893_v3 }
 0xdb9   : > { %v2900_v11 = vunpack.i.h.bf16 %v2898_v8  ;;  %v2899_v12 = vunpack.i.l.bf16 %v2898_v8  ;;  %2902 = vrot.lane.b32.xlu1 %v2901_v4, %s2974_s29  ;;  %2662 = vmatprep.subr.bf16.mxu1 %v2661_v5 }
 0xdba   : > { %v1658_v13 = vsel %vm503_vm0, %v2890_v6, %v2895_v9  ;;  %v1657_v14 = vsel %vm503_vm0, %v2889_v7, %v2894_v10  ;;  %2664 = vmatpush3.bf16.msra.mxu1 %v2661_v5  ;;  %vm1823_vm0 = vcmp.eq.s32.totalorder %v1818_v20, %v3363_v38 }
 0xdbb   : > { %v1661_v15 = vsel %vm882_vm6, %v1657_v14, %v2899_v12  ;;  %v1662_v16 = vsel %vm882_vm6, %v1658_v13, %v2900_v11  ;;  %vm2685_vm1 = vmpackc.low %vm1823_vm0, %vm1822_vm15 }
 0xdbc   : > { %v2906_v18 = vpack.i.bf16 %v1662_v16, %v1661_v15  ;;  %v2665_v19 = vpack.c.bf16 %v1662_v16, %v1661_v15  ;;  %2686 = vmatprep.subr.msk.bf16.mxu0 %vm2685_vm1, %v2980_v34 }
 0xdbd   : > { %2912 = vrot.lane.b32.xlu1 %v2901_v4, %s2971_s24  ;;  %2688 = vmatpush3.bf16.msk.msra.mxu0 %vm2685_vm1, %v2980_v34  ;;  %v2101_v34 = vld [vmem:[%s3480_s14 + $0x8] sm:$0xff] }
 0xdbe   : > { %2907 = vrot.lane.b32.xlu0 %v2906_v18, %s2974_s29  ;;  %2666 = vmatprep.subr.bf16.mxu1 %v2665_v19 }
 0xdbf   : > { %2668 = vmatpush3.bf16.msra.mxu1 %v2665_v19 }
 0xdc1   : > { %1701 = vperm.xlu1 %2720, %v1695_v22  }
 0xdc2   : > { %2917 = vrot.lane.b32.xlu0 %v2906_v18, %s2971_s24 }
 0xdc5   : > { %1711 = vperm.xlu1 %2720, %v1697_v27  }
 0xdc6   : > { %1706 = vperm.xlu0 %2719, %v1696_v30  }
 0xdca   : > { %1716 = vperm.xlu0 %2719, %v1698_v33  }
 0xe2b   : > { %v2903_v39 = vpop.permute.xlu1 %2902 }
 0xe2c   : > { %v2905_v40 = vunpack.i.h.bf16 %v2903_v39  ;;  %v2904_v41 = vunpack.i.l.bf16 %v2903_v39  ;;  %v2100_v39 = vld [vmem:[%s3480_s14] sm:$0xff] }
 0xe2e   : > { %v2669_v46 = vpack.c.bf16 %v2905_v40, %v2904_v41  ;;  %v2098_v40 = vld [vmem:[%s3479_s13] sm:$0xff] }
 0xe2f   : > { %v2913_v47 = vpop.permute.xlu1 %2912 }
 0xe30   : > { %v2908_v49 = vpop.permute.xlu0 %2907  ;;  %2670 = vmatprep.subr.bf16.mxu1 %v2669_v46  ;;  %v2915_v50 = vunpack.i.h.bf16 %v2913_v47  ;;  %v2914_v52 = vunpack.i.l.bf16 %v2913_v47 }
 0xe31   : > { %v2910_v53 = vunpack.i.h.bf16 %v2908_v49  ;;  %v2909_v54 = vunpack.i.l.bf16 %v2908_v49  ;;  %2672 = vmatpush3.bf16.msra.mxu1 %v2669_v46 }
 0xe32   : > { %v2677_v56 = vpack.c.bf16 %v2915_v50, %v2914_v52 }
 0xe33   : > { %v2673_v55 = vpack.c.bf16 %v2910_v53, %v2909_v54 }
 0xe34   : > { %v2918_v36 = vpop.permute.xlu0 %2917 }
 0xe35   : > { %v2920_v38 = vunpack.i.h.bf16 %v2918_v36  ;;  %v2919_v42 = vunpack.i.l.bf16 %v2918_v36  ;;  %2674 = vmatprep.subr.bf16.mxu1 %v2673_v55 }
 0xe36   : > { %2676 = vmatpush3.bf16.msra.mxu1 %v2673_v55 }
 0xe37   : > { %2678 = vmatprep.subr.bf16.mxu1 %v2677_v56  ;;  %v2681_v44 = vpack.c.bf16 %v2920_v38, %v2919_v42 }
 0xe3a   : > { %2680 = vmatpush3.bf16.msra.mxu1 %v2677_v56 }
 0xe3b   : > { %2682 = vmatprep.subr.bf16.mxu1 %v2681_v44 }
 0xe3e   : > { %2684 = vmatpush3.bf16.msra.mxu1 %v2681_v44 }
 0xe3f   : > { %2690 = vmatprep.subr.bf16.mxu1 %v2689_v32 }
 0xe40   : > { %v1702_v45 = vpop.permute.xlu1 %1701 }
 0xe41   : > { %2541 = vmatmul.mubr.msk.f32.vlgmr.msra.gmra.mrb[8].mxu1 %vm943_vm7, %v1692_v57 }
 0xe42   : > { %2543 = vmatprep.mubr.msk.f32.mxu1 %vm943_vm7, %v1693_v58  ;;  %2692 = vmatpush3.bf16.msra.mxu1 %v2689_v32 }
 0xe44   : > { %v1712_v1 = vpop.permute.xlu1 %1711 }
 0xe45   : > { %2544 = vmatmul.mubr.msk.f32.gmra.mrb[10].mxu1 %vm943_vm7, %v1694_v43  ;;  %v1707_v59 = vpop.permute.xlu0 %1706 }
 0xe46   : > { %2560 = vmatprep.mubr.msk.f32.mxu1 %vm551_vm3, %v3289_v51 }
 0xe49   : > { %2561 = vmatmul.mubr.msk.f32.vlgmr.msra.gmra.mrb[12].mxu1 %vm551_vm3, %v3285_v48  ;;  %v1717_v48 = vpop.permute.xlu0 %1716 }
 0xe4a   : > { %2563 = vmatprep.mubr.msk.f32.mxu1 %vm551_vm3, %v3297_v35 }
 0xe4d   : > { %2564 = vmatmul.mubr.msk.f32.gmra.mrb[14].mxu1 %vm551_vm3, %v3301_v37 }
 0xf14   : > { %v2542_v60 = vpop.f32.mrb[8].mxu1 }
 0xf15   : > { %v1797_v61 = vpop.f32.mrb[9].mxu1  ;;  %v1803_v63 = vadd.f32 %v2542_v60, %v1707_v59 }
 0xf16   : > { %v1798_v62 = vadd.f32 %v1797_v61, %v1702_v45 }
 0xf18   : > { %v2545_v0 = vpop.f32.mrb[10].mxu1  ;;  %2550 = vmatprep.mubr.msk.f32.mxu0 %vm551_vm3, %v1798_v62 }
 0xf19   : > { %v1807_v51 = vpop.f32.mrb[11].mxu1  ;;  %2551 = vmatmul.mubr.msk.f32.vlgmr.msra.gmra.mrb[12].mxu0 %vm551_vm3, %v1803_v63  ;;  %v1813_v3 = vadd.f32 %v2545_v0, %v1717_v48 }
 0xf1a   : > { %v1808_v2 = vadd.f32 %v1807_v51, %v1712_v1 }
 0xf1c   : > { %2553 = vmatprep.mubr.msk.f32.mxu0 %vm551_vm3, %v1808_v2  ;;  %v3422_v35 = vpop.f32.mrb[12].mxu1 }
 0xf1d   : > { %2554 = vmatmul.mubr.msk.f32.gmra.mrb[14].mxu0 %vm551_vm3, %v1813_v3  ;;  %v3425_v37 = vpop.f32.mrb[13].mxu1  ;;  %vm2112_vm3 = vcmask 261120  }
 0xf1e   : > { %2574 = vmatprep.mubr.msk.f32.mxu0 %vm2112_vm3, %v2098_v40 }
 0xf20   : > { %v3427_v4 = vpop.f32.mrb[14].mxu1 }
 0xf21   : > { %v3429_v5 = vpop.f32.mrb[15].mxu1 }
 0xfec   : > { %v2552_v6 = vpop.f32.mrb[12].mxu0 }
 0xfed   : > { %v1921_v7 = vpop.f32.mrb[13].mxu0  ;;  %v2040_v8 = vsel %vm2036_vm2, %v2552_v6, 0.0 }
 0xfee   : > { %2041 = vadd.xlane.f32.xlu0 %v2040_v8  ;;  %v2037_v9 = vsel %vm2036_vm2, %v1921_v7, 0.0 }
 0xfef   : > { %2038 = vadd.xlane.f32.xlu1 %v2037_v9 }
 0xff0   : > { %v2555_v10 = vpop.f32.mrb[14].mxu0 }
 0xff1   : > { %v1931_v11 = vpop.f32.mrb[15].mxu0  ;;  %v2046_v12 = vsel %vm2036_vm2, %v2555_v10, 0.0 }
 0xff2   : > { %v2043_v13 = vsel %vm2036_vm2, %v1931_v11, 0.0 }
 0xff3   : > { %2047 = vadd.xlane.f32.xlu1 %v2046_v12  ;;  %2044 = vadd.xlane.f32.xlu0 %v2043_v13 }
0x107b   : > { %v2042_v14 = vpop.xlane.xlu0 %2041 }
0x107c   : > { %v2051_v15 = vmul.f32 0.125, %v2042_v14  ;;  %v2039_v16 = vpop.xlane.xlu1 %2038 }
0x107d   : > { %v2050_v17 = vmul.f32 0.125, %v2039_v16 }
0x107e   : > { %v2055_v18 = vsub.f32 %v2552_v6, %v2051_v15 }
0x107f   : > { %v2054_v19 = vsub.f32 %v1921_v7, %v2050_v17 }
0x1080   : > { %v2048_v20 = vpop.xlane.xlu1 %2047  ;;  %v2045_v21 = vpop.xlane.xlu0 %2044  ;;  %v2059_v22 = vmul.f32 %v2055_v18, %v2055_v18 }
0x1081   : > { %v2053_v23 = vmul.f32 0.125, %v2048_v20  ;;  %v2052_v24 = vmul.f32 0.125, %v2045_v21  ;;  %v2058_v25 = vmul.f32 %v2054_v19, %v2054_v19 }
0x1082   : > { %v2065_v26 = vsel %vm2036_vm2, %v2059_v22, 0.0 }
0x1083   : > { %v2057_v27 = vsub.f32 %v2555_v10, %v2053_v23  ;;  %v2056_v28 = vsub.f32 %v1931_v11, %v2052_v24  ;;  %2066 = vadd.xlane.f32.xlu1 %v2065_v26  ;;  %v2062_v29 = vsel %vm2036_vm2, %v2058_v25, 0.0 }
0x1084   : > { %2063 = vadd.xlane.f32.xlu0 %v2062_v29 }
0x1085   : > { %v2061_v30 = vmul.f32 %v2057_v27, %v2057_v27  ;;  %v2060_v31 = vmul.f32 %v2056_v28, %v2056_v28 }
0x1087   : > { %v2071_v32 = vsel %vm2036_vm2, %v2061_v30, 0.0  ;;  %v2068_v33 = vsel %vm2036_vm2, %v2060_v31, 0.0 }
0x1088   : > { %2072 = vadd.xlane.f32.xlu1 %v2071_v32  ;;  %2069 = vadd.xlane.f32.xlu0 %v2068_v33 }
0x1099   : > { %2109 = vperm.xlu1 %2720, %v2101_v34  }
0x109e   : > { %2104 = vperm.xlu0 %2719, %v2100_v39  }
0x1110   : > { %v2067_v41 = vpop.xlane.xlu1 %2066 }
0x1111   : > { %v2075_v46 = vmul.f32 0.125, %v2067_v41  ;;  %v2064_v47 = vpop.xlane.xlu0 %2063 }
0x1112   : > { %v2074_v49 = vmul.f32 0.125, %v2064_v47 }
0x1113   : > { %v2079_v50 = vadd.f32 1e-05, %v2075_v46 }
0x1114   : > { %v2078_v52 = vadd.f32 1e-05, %v2074_v49 }
0x1115   : > { %2955 = vrsqrt.f32 %v2079_v50  ;;  %v2073_v53 = vpop.xlane.xlu1 %2072  ;;  %v2070_v54 = vpop.xlane.xlu0 %2069 }
0x1116   : > { %2957 = vrsqrt.f32 %v2078_v52  ;;  %v2077_v55 = vmul.f32 0.125, %v2073_v53  ;;  %v2076_v36 = vmul.f32 0.125, %v2070_v54 }
0x1118   : > { %v2081_v56 = vadd.f32 1e-05, %v2077_v55  ;;  %v2080_v38 = vadd.f32 1e-05, %v2076_v36 }
0x111a   : > { %2959 = vrsqrt.f32 %v2081_v56 }
0x111b   : > { %2961 = vrsqrt.f32 %v2080_v38 }
0x111f   : > { %v2956_v42 = vpop.eup %2955 }
0x1120   : > { %v2958_v44 = vpop.eup %2957  ;;  %v2087_v57 = vmul.f32 %v2956_v42, %v2055_v18 }
0x1121   : > { %v2086_v58 = vmul.f32 %v2958_v44, %v2054_v19 }
0x1122   : > { %v2091_v43 = vmax.f32 %v2087_v57, 0.0 }
0x1123   : > { %v2090_v45 = vmax.f32 %v2086_v58, 0.0 }
0x1124   : > { %v2960_v59 = vpop.eup %2959  ;;  %v2095_v60 = vadd.f32 %v3422_v35, %v2091_v43  ;;  %v2099_v35 = vld [vmem:[%s3479_s13 + $0x8] sm:$0xff] }
0x1125   : > { %v2962_v61 = vpop.eup %2961  ;;  %v2094_v62 = vadd.f32 %v2090_v45, %v3425_v37  ;;  %v2089_v63 = vmul.f32 %v2960_v59, %v2057_v27  ;;  %v2110_v37 = vpop.permute.xlu1 %2109 }
0x1126   : > { %v2088_v0 = vmul.f32 %v2962_v61, %v2056_v28 }
0x1127   : > { %v2693_v1 = vpack.c.bf16 %v2095_v60, %v2094_v62  ;;  %v2093_v51 = vmax.f32 %v2089_v63, 0.0 }
0x1128   : > { %v2092_v48 = vmax.f32 %v2088_v0, 0.0 }
0x1129   : > { %2694 = vmatprep.subr.bf16.mxu0 %v2693_v1  ;;  %v2097_v2 = vadd.f32 %v3427_v4, %v2093_v51  ;;  %v2105_v4 = vpop.permute.xlu0 %2104 }
0x112a   : > { %2696 = vmatpush3.bf16.msra.mxu0 %v2693_v1  ;;  %v2096_v3 = vadd.f32 %v2092_v48, %v3429_v5 }
0x112c   : > { %v2697_v6 = vpack.c.bf16 %v2097_v2, %v2096_v3 }
0x112e   : > { %2698 = vmatprep.subr.bf16.mxu0 %v2697_v6 }
0x112f   : > { %2700 = vmatpush3.bf16.msra.mxu0 %v2697_v6 }
0x1132   : > { %2575 = vmatmul.mubr.msk.f32.vlgmr.msra.gmra.mrb[16].mxu0 %vm2112_vm3, %v2099_v35 }
0x1205   : > { %v2576_v7 = vpop.f32.mrb[16].mxu0 }
0x1206   : > { %v2191_v8 = vadd.f32 %v2576_v7, %v2110_v37  ;;  %v2185_v9 = vpop.f32.mrb[17].mxu0 }
0x1207   : > { %v2186_v5 = vadd.f32 %v2185_v9, %v2105_v4 }
0x1208   : > { %2195 = vst.msk [vmem:[%s491_s28 + $0x8] sm:$0xff] %vm2036_vm2, %v2191_v8 }
0x1209   : > { %2194 = vst.msk [vmem:[%s491_s28] sm:$0xff] %vm2036_vm2, %v2186_v5 }
0x120a PF: > { %s25_s18 = sadd.s32 1, %s2969_s18  }
0x120b   : > { %p22_p4 = scmp.ge.s32.totalorder %s25_s18, 4  }
0x120d   :  { %24 = sbr.rel (!%p22_p4) target bundleno = 1 (0x1), region = 110 }

</bundles_post_ra>
